<compile_context>
chip_gen: v7x
topology: tpu7x:2x2x1
jax: 0.10.0
libtpu: 0.0.40
codegen_flags: <defaults>
</compile_context>

<pallas_src>
import functools
import math

import jax
import jax.numpy as jnp
from jax.experimental import pallas as pl
from jax.experimental.pallas import tpu as pltpu


# -----------------------------------------------------------------------------
# Pallas kernels: one grid step owns a (tm, 4*Cin) slab of input pixels.
# -----------------------------------------------------------------------------

def _deconv_ln_silu_kernel(x_ref, w_ref, b_ref, g_ref, bt_ref, o_ref, *, cout, eps):
    # Fused stride-2 ConvTranspose2d (as matmul) + bias + LayerNorm2d + SiLU.
    acc = jnp.dot(x_ref[...], w_ref[...], preferred_element_type=jnp.float32)
    acc = acc + b_ref[...]
    g = g_ref[...]        # (1, cout)
    be = bt_ref[...]      # (1, cout)
    # Each of the 4 column blocks is the full channel vector of one output
    # sub-pixel (r, s), so LayerNorm over channels is applied per block.
    for blk in range(4):
        v = acc[:, blk * cout:(blk + 1) * cout]
        mu = jnp.mean(v, axis=-1, keepdims=True)
        var = jnp.mean(jnp.square(v - mu), axis=-1, keepdims=True)
        vn = (v - mu) * jax.lax.rsqrt(var + eps)
        vn = vn * g + be
        vn = vn * jax.nn.sigmoid(vn)                      # SiLU
        o_ref[:, blk * cout:(blk + 1) * cout] = vn.astype(o_ref.dtype)


def _deconv_kernel(x_ref, w_ref, b_ref, o_ref):
    # Final layer: transposed conv + bias only.
    acc = jnp.dot(x_ref[...], w_ref[...], preferred_element_type=jnp.float32)
    o_ref[...] = (acc + b_ref[...]).astype(o_ref.dtype)


# -----------------------------------------------------------------------------
# Parameter / activation re-layout helpers (plain JAX, layout plumbing only).
# -----------------------------------------------------------------------------

def _round_up(a, b):
    return ((a + b - 1) // b) * b


def _choose_tm(K, N, budget_bytes=24 * 1024 * 1024):
    """Largest power-of-two M-tile whose double-buffered x/out tiles plus the
    resident weight fit the VMEM budget (counting 128-lane padding)."""
    kp = _round_up(K, 128)
    np_ = _round_up(N, 128)
    weight_bytes = kp * np_ * 4
    tm = 1024
    while tm > 8:
        need = 2 * tm * (kp + np_) * 4 + weight_bytes
        if need <= budget_bytes:
            break
        tm //= 2
    return tm


def _build_big_weight(w_t):
    """(Cin, Cout, 3, 3) PyTorch ConvTranspose2d weight -> (4*Cin, 4*Cout).

    Row index  = (dy*2+dx)*Cin + cin   (2x2 input neighbourhood offset)
    Col index  = (r*2+s)*Cout + cout   (2x2 output sub-pixel parity)
    """
    cin, cout = w_t.shape[0], w_t.shape[1]
    big = jnp.zeros((2, 2, cin, 2, 2, cout), dtype=w_t.dtype)
    for dy in (0, 1):
        for dx in (0, 1):
            for r in (0, 1):
                for s in (0, 1):
                    ky = r + 1 - 2 * dy
                    kx = s + 1 - 2 * dx
                    if 0 <= ky < 3 and 0 <= kx < 3:
                        big = big.at[dy, dx, :, r, s, :].set(w_t[:, :, ky, kx])
    return big.reshape(4 * cin, 4 * cout)


def _make_patches(x):
    """(BT, H, W, C) -> (BT*H*W, 4*C): 2x2 forward neighbourhood per pixel,
    zero past the bottom/right edge. K index = (dy*2+dx)*C + c."""
    BT, H, W, C = x.shape
    xp = jnp.pad(x, ((0, 0), (0, 1), (0, 1), (0, 0)))
    shifts = [xp[:, dy:dy + H, dx:dx + W, :] for dy in (0, 1) for dx in (0, 1)]
    patch = jnp.stack(shifts, axis=3)                    # (BT, H, W, 4, C)
    return patch.reshape(BT * H * W, 4 * C)


# -----------------------------------------------------------------------------
# One transposed-conv layer (optionally fused with LayerNorm2d + SiLU).
# -----------------------------------------------------------------------------

def deconv2x_layer(x, w_t, b, gamma=None, beta=None, *, eps=1e-5, tm=None,
                   compute_dtype=None):
    """ConvTranspose2d(Cin->Cout, k=3, s=2, p=1, op=1) [+ LayerNorm2d + SiLU].

    x   : (BT, H, W, Cin)  channels-last activations (float32)
    w_t : (Cin, Cout, 3, 3) PyTorch ConvTranspose2d weight layout
    b   : (Cout,)
    returns (BT, 2H, 2W, Cout) float32
    """
    # TODO(synk): specialized to the module's default geometry (kernel=3,
    # stride=2, padding=1, output_padding=1); other geometries would need a
    # general im2col-style path.
    BT, H, W, Cin = x.shape
    Cout = w_t.shape[1]
    K = 4 * Cin
    N = 4 * Cout
    M = BT * H * W

    xf = _make_patches(x)                                # (M, K)
    wf = _build_big_weight(w_t)                          # (K, N)
    bf = jnp.tile(b, 4).reshape(1, N).astype(jnp.float32)

    # Optional bf16 compute (HBM-bound at production shapes); accumulation
    # stays f32 via preferred_element_type. Default f32 keeps the check tight.
    if compute_dtype is not None:
        xf = xf.astype(compute_dtype)
        wf = wf.astype(compute_dtype)

    if tm is None:
        tm = _choose_tm(K, N)
    tm = max(8, (tm // 8) * 8)                           # sublane-aligned tile

    n_blocks = pl.cdiv(M, tm)
    Mp = n_blocks * tm
    if Mp != M:                                          # ragged M: pad, don't assert
        xf = jnp.pad(xf, ((0, Mp - M), (0, 0)))

    ln = gamma is not None
    if ln:
        kernel = functools.partial(_deconv_ln_silu_kernel, cout=Cout, eps=eps)
        extra_in = [gamma.reshape(1, Cout).astype(jnp.float32),
                    beta.reshape(1, Cout).astype(jnp.float32)]
        extra_specs = [pl.BlockSpec((1, Cout), lambda i: (0, 0)),
                       pl.BlockSpec((1, Cout), lambda i: (0, 0))]
    else:
        kernel = _deconv_kernel
        extra_in, extra_specs = [], []

    cost = pl.CostEstimate(
        flops=2 * Mp * K * N,
        transcendentals=(Mp * N) if ln else 0,
        bytes_accessed=Mp * K * xf.dtype.itemsize
                       + K * N * wf.dtype.itemsize
                       + Mp * N * 4)

    yf = pl.pallas_call(
        kernel,
        out_shape=jax.ShapeDtypeStruct((Mp, N), jnp.float32),
        grid_spec=pltpu.PrefetchScalarGridSpec(
            num_scalar_prefetch=0,
            grid=(n_blocks,),
            in_specs=[
                pl.BlockSpec((tm, K), lambda i: (i, 0)),   # activations: tiled over M
                pl.BlockSpec((K, N), lambda i: (0, 0)),    # weight: VMEM-resident
                pl.BlockSpec((1, N), lambda i: (0, 0)),    # bias: resident
            ] + extra_specs,
            out_specs=pl.BlockSpec((tm, N), lambda i: (i, 0)),
        ),
        compiler_params=pltpu.CompilerParams(
            dimension_semantics=("parallel",),
            vmem_limit_bytes=32 * 1024 * 1024),
        cost_estimate=cost,
    )(xf, wf, bf, *extra_in)

    yf = yf[:M]
    # TODO(synk): the sub-pixel interleave below is a separate XLA transpose
    # (extra HBM round trip); could be fused into the kernel epilogue with
    # whole-row tiles, kept as plain-JAX plumbing here for robustness.
    y = yf.reshape(BT, H, W, 2, 2, Cout)                 # (bt,h,w,r,s,c)
    y = jnp.transpose(y, (0, 1, 3, 2, 4, 5)).reshape(BT, 2 * H, 2 * W, Cout)
    return y


# -----------------------------------------------------------------------------
# Full PatchRecovery_StepByStep forward.
# -----------------------------------------------------------------------------

def patch_recovery_step_by_step(x, params, *, eps=1e-5, tm=None, compute_dtype=None):
    """x: (B, T, H, W, D).  params: list of layer dicts; all but the last have
    keys w, b, gamma, beta (ConvTranspose2d + LayerNorm2d + SiLU); the last has
    w, b only.  Returns (B, T, H*2**L, W*2**L, out_chans), L = len(params)."""
    B, T, H, W, D = x.shape
    h = x.reshape(B * T, H, W, D)            # 'b t h w d -> (b t) h w d'
    for p in params[:-1]:
        h = deconv2x_layer(h, p["w"], p["b"], p["gamma"], p["beta"],
                           eps=eps, tm=tm, compute_dtype=compute_dtype)
    p = params[-1]
    h = deconv2x_layer(h, p["w"], p["b"], None, None, tm=tm,
                       compute_dtype=compute_dtype)
    BT, Ho, Wo, C = h.shape
    return h.reshape(B, T, Ho, Wo, C)        # '(b t) h w c -> b t h w c'


# -----------------------------------------------------------------------------
# Pure-JAX reference (independent path: dilated conv) for correctness checks.
# -----------------------------------------------------------------------------

def _ref_conv_transpose_2x(x_nhwc, w_t, b):
    # ConvTranspose2d(k=3, s=2, p=1, op=1) == conv of the 2x-dilated input with
    # the spatially flipped, channel-swapped kernel, padding (1, 2) per dim.
    x_nchw = jnp.transpose(x_nhwc, (0, 3, 1, 2))
    w_conv = jnp.transpose(w_t[:, :, ::-1, ::-1], (1, 0, 2, 3))     # (Cout,Cin,3,3)
    y = jax.lax.conv_general_dilated(
        x_nchw, w_conv, window_strides=(1, 1),
        padding=[(1, 2), (1, 2)],
        lhs_dilation=(2, 2), rhs_dilation=(1, 1),
        dimension_numbers=("NCHW", "OIHW", "NCHW"))
    y = y + b.reshape(1, -1, 1, 1)
    return jnp.transpose(y, (0, 2, 3, 1))


def _ref_ln_silu(y_nhwc, gamma, beta, eps):
    mu = jnp.mean(y_nhwc, axis=-1, keepdims=True)
    var = jnp.mean(jnp.square(y_nhwc - mu), axis=-1, keepdims=True)
    yn = (y_nhwc - mu) * jax.lax.rsqrt(var + eps) * gamma + beta
    return yn * jax.nn.sigmoid(yn)


if __name__ == "__main__":
    # Small shapes consistent with the module (shrunk patch_size / embed_dim).
    patch_size = 4            # -> log2(4)-1 = 1 inner layer + 1 final layer
    embed_dim = 32
    out_chans = 3
    B, T, H, W = 2, 2, 4, 4
    eps = 1e-5

    n_inner = int(round(math.log2(patch_size))) - 1
    keys = jax.random.split(jax.random.PRNGKey(0), 4 * n_inner + 3)
    ki = 0
    params = []
    for _ in range(n_inner):
        w = 0.05 * jax.random.normal(keys[ki], (embed_dim, embed_dim, 3, 3), jnp.float32); ki += 1
        b = 0.01 * jax.random.normal(keys[ki], (embed_dim,), jnp.float32); ki += 1
        g = 1.0 + 0.1 * jax.random.normal(keys[ki], (embed_dim,), jnp.float32); ki += 1
        bt = 0.05 * jax.random.normal(keys[ki], (embed_dim,), jnp.float32); ki += 1
        params.append(dict(w=w, b=b, gamma=g, beta=bt))
    w_last = 0.05 * jax.random.normal(keys[ki], (embed_dim, out_chans, 3, 3), jnp.float32); ki += 1
    b_last = 0.01 * jax.random.normal(keys[ki], (out_chans,), jnp.float32); ki += 1
    params.append(dict(w=w_last, b=b_last, gamma=None, beta=None))

    x = jax.random.normal(keys[-1], (B, T, H, W, embed_dim), jnp.float32)

    # tm=48 exercises the multi-step grid and the ragged (M % tm != 0) path.
    out = patch_recovery_step_by_step(x, params, eps=eps, tm=48)
    out = jax.block_until_ready(out)

    # Reference forward (independent dilated-conv path).
    href = x.reshape(B * T, H, W, embed_dim)
    for p in params[:-1]:
        href = _ref_conv_transpose_2x(href, p["w"], p["b"])
        href = _ref_ln_silu(href, p["gamma"], p["beta"], eps)
    href = _ref_conv_transpose_2x(href, params[-1]["w"], params[-1]["b"])
    ref = href.reshape(B, T, H * patch_size, W * patch_size, out_chans)

    assert out.shape == (B, T, H * patch_size, W * patch_size, out_chans), out.shape
    assert jnp.allclose(out, ref, atol=1e-4, rtol=1e-4), (
        float(jnp.max(jnp.abs(out - ref))))
    print("KERNEL_OK")
</pallas_src>

<mosaic_0001>
module attributes {stable_mosaic.version = 11 : i64} {
  func.func @_deconv_ln_silu_kernel(%arg0: i32, %arg1: memref<48x128xf32, #tpu.memory_space<vmem>>, %arg2: memref<128x128xf32, #tpu.memory_space<vmem>>, %arg3: memref<1x128xf32, #tpu.memory_space<vmem>>, %arg4: memref<1x32xf32, #tpu.memory_space<vmem>>, %arg5: memref<1x32xf32, #tpu.memory_space<vmem>>, %arg6: memref<48x128xf32, #tpu.memory_space<vmem>>) attributes {dimension_semantics = [#tpu.dimension_semantics<parallel>], iteration_bounds = array<i64: 2>, scalar_prefetch = 0 : i64, scratch_operands = 0 : i64, tpu.core_type = #tpu.core_type<tc>, window_params = [{transform_indices = @transform_0, window_bounds = array<i64: 48, 128>}, {pipeline_mode = #tpu.pipeline_mode<synchronous>, transform_indices = @transform_1, window_bounds = array<i64: 128, 128>}, {pipeline_mode = #tpu.pipeline_mode<synchronous>, transform_indices = @transform_2, window_bounds = array<i64: 1, 128>}, {pipeline_mode = #tpu.pipeline_mode<synchronous>, transform_indices = @transform_3, window_bounds = array<i64: 1, 32>}, {pipeline_mode = #tpu.pipeline_mode<synchronous>, transform_indices = @transform_4, window_bounds = array<i64: 1, 32>}, {transform_indices = @transform_5, window_bounds = array<i64: 48, 128>}]} {
    %c0 = arith.constant 0 : index
    %c0_0 = arith.constant 0 : index
    %0 = vector.load %arg1[%c0, %c0_0] : memref<48x128xf32, #tpu.memory_space<vmem>>, vector<48x128xf32>
    %c0_1 = arith.constant 0 : index
    %c0_2 = arith.constant 0 : index
    %1 = vector.load %arg2[%c0_1, %c0_2] : memref<128x128xf32, #tpu.memory_space<vmem>>, vector<128x128xf32>
    %cst = arith.constant dense<0.000000e+00> : vector<48x128xf32>
    %2 = tpu.matmul %0, %1, %cst {dimension_numbers = #tpu.dot_dimension_numbers<[1], [0], [0], [1], [0, 0, 1, 1], [], []>} : vector<48x128xf32>, vector<128x128xf32>, vector<48x128xf32> -> vector<48x128xf32>
    %c0_3 = arith.constant 0 : index
    %c0_4 = arith.constant 0 : index
    %3 = vector.load %arg3[%c0_3, %c0_4] : memref<1x128xf32, #tpu.memory_space<vmem>>, vector<1x128xf32>
    %4 = vector.broadcast %3 : vector<1x128xf32> to vector<48x128xf32>
    %5 = arith.addf %2, %4 : vector<48x128xf32>
    %c0_5 = arith.constant 0 : index
    %c0_6 = arith.constant 0 : index
    %6 = vector.load %arg4[%c0_5, %c0_6] : memref<1x32xf32, #tpu.memory_space<vmem>>, vector<1x32xf32>
    %c0_7 = arith.constant 0 : index
    %c0_8 = arith.constant 0 : index
    %7 = vector.load %arg5[%c0_7, %c0_8] : memref<1x32xf32, #tpu.memory_space<vmem>>, vector<1x32xf32>
    %8 = vector.extract_strided_slice %5 {offsets = [0, 0], sizes = [48, 32], strides = [1, 1]} : vector<48x128xf32> to vector<48x32xf32>
    %cst_9 = arith.constant dense<0.000000e+00> : vector<48xf32>
    %9 = vector.multi_reduction <add>, %8, %cst_9 [1] : vector<48x32xf32> to vector<48xf32>
    %10 = vector.shape_cast %9 : vector<48xf32> to vector<48x1xf32>
    %cst_10 = arith.constant 3.200000e+01 : f32
    %11 = vector.broadcast %cst_10 : f32 to vector<48x1xf32>
    %12 = arith.divf %10, %11 : vector<48x1xf32>
    %13 = vector.broadcast %12 : vector<48x1xf32> to vector<48x32xf32>
    %14 = arith.subf %8, %13 : vector<48x32xf32>
    %15 = arith.mulf %14, %14 : vector<48x32xf32>
    %cst_11 = arith.constant dense<0.000000e+00> : vector<48xf32>
    %16 = vector.multi_reduction <add>, %15, %cst_11 [1] : vector<48x32xf32> to vector<48xf32>
    %17 = vector.shape_cast %16 : vector<48xf32> to vector<48x1xf32>
    %cst_12 = arith.constant 3.200000e+01 : f32
    %18 = vector.broadcast %cst_12 : f32 to vector<48x1xf32>
    %19 = arith.divf %17, %18 : vector<48x1xf32>
    %20 = vector.broadcast %12 : vector<48x1xf32> to vector<48x32xf32>
    %21 = arith.subf %8, %20 : vector<48x32xf32>
    %cst_13 = arith.constant 9.99999974E-6 : f32
    %22 = vector.broadcast %cst_13 : f32 to vector<48x1xf32>
    %23 = arith.addf %19, %22 : vector<48x1xf32>
    %24 = math.rsqrt %23 : vector<48x1xf32>
    %25 = vector.broadcast %24 : vector<48x1xf32> to vector<48x32xf32>
    %26 = arith.mulf %21, %25 : vector<48x32xf32>
    %27 = vector.broadcast %6 : vector<1x32xf32> to vector<48x32xf32>
    %28 = arith.mulf %26, %27 : vector<48x32xf32>
    %29 = vector.broadcast %7 : vector<1x32xf32> to vector<48x32xf32>
    %30 = arith.addf %28, %29 : vector<48x32xf32>
    %31 = arith.negf %30 : vector<48x32xf32>
    %32 = math.exp %31 : vector<48x32xf32>
    %cst_14 = arith.constant 1.000000e+00 : f32
    %33 = vector.broadcast %cst_14 : f32 to vector<48x32xf32>
    %34 = arith.addf %33, %32 : vector<48x32xf32>
    %35 = arith.divf %33, %34 : vector<48x32xf32>
    %36 = arith.mulf %30, %35 : vector<48x32xf32>
    %c0_15 = arith.constant 0 : index
    %c0_16 = arith.constant 0 : index
    %37 = vector.load %arg6[%c0_15, %c0_16] : memref<48x128xf32, #tpu.memory_space<vmem>>, vector<48x32xf32>
    tpu.vector_store %arg6[%c0_15, %c0_16], %36 {strides = array<i32>} : memref<48x128xf32, #tpu.memory_space<vmem>>, vector<48x32xf32>,
    %38 = vector.extract_strided_slice %5 {offsets = [0, 32], sizes = [48, 32], strides = [1, 1]} : vector<48x128xf32> to vector<48x32xf32>
    %cst_17 = arith.constant dense<0.000000e+00> : vector<48xf32>
    %39 = vector.multi_reduction <add>, %38, %cst_17 [1] : vector<48x32xf32> to vector<48xf32>
    %40 = vector.shape_cast %39 : vector<48xf32> to vector<48x1xf32>
    %cst_18 = arith.constant 3.200000e+01 : f32
    %41 = vector.broadcast %cst_18 : f32 to vector<48x1xf32>
    %42 = arith.divf %40, %41 : vector<48x1xf32>
    %43 = vector.broadcast %42 : vector<48x1xf32> to vector<48x32xf32>
    %44 = arith.subf %38, %43 : vector<48x32xf32>
    %45 = arith.mulf %44, %44 : vector<48x32xf32>
    %cst_19 = arith.constant dense<0.000000e+00> : vector<48xf32>
    %46 = vector.multi_reduction <add>, %45, %cst_19 [1] : vector<48x32xf32> to vector<48xf32>
    %47 = vector.shape_cast %46 : vector<48xf32> to vector<48x1xf32>
    %cst_20 = arith.constant 3.200000e+01 : f32
    %48 = vector.broadcast %cst_20 : f32 to vector<48x1xf32>
    %49 = arith.divf %47, %48 : vector<48x1xf32>
    %50 = vector.broadcast %42 : vector<48x1xf32> to vector<48x32xf32>
    %51 = arith.subf %38, %50 : vector<48x32xf32>
    %cst_21 = arith.constant 9.99999974E-6 : f32
    %52 = vector.broadcast %cst_21 : f32 to vector<48x1xf32>
    %53 = arith.addf %49, %52 : vector<48x1xf32>
    %54 = math.rsqrt %53 : vector<48x1xf32>
    %55 = vector.broadcast %54 : vector<48x1xf32> to vector<48x32xf32>
    %56 = arith.mulf %51, %55 : vector<48x32xf32>
    %57 = vector.broadcast %6 : vector<1x32xf32> to vector<48x32xf32>
    %58 = arith.mulf %56, %57 : vector<48x32xf32>
    %59 = vector.broadcast %7 : vector<1x32xf32> to vector<48x32xf32>
    %60 = arith.addf %58, %59 : vector<48x32xf32>
    %61 = arith.negf %60 : vector<48x32xf32>
    %62 = math.exp %61 : vector<48x32xf32>
    %cst_22 = arith.constant 1.000000e+00 : f32
    %63 = vector.broadcast %cst_22 : f32 to vector<48x32xf32>
    %64 = arith.addf %63, %62 : vector<48x32xf32>
    %65 = arith.divf %63, %64 : vector<48x32xf32>
    %66 = arith.mulf %60, %65 : vector<48x32xf32>
    %c0_23 = arith.constant 0 : index
    %c32 = arith.constant 32 : index
    %67 = vector.load %arg6[%c0_23, %c32] : memref<48x128xf32, #tpu.memory_space<vmem>>, vector<48x32xf32>
    tpu.vector_store %arg6[%c0_23, %c32], %66 {strides = array<i32>} : memref<48x128xf32, #tpu.memory_space<vmem>>, vector<48x32xf32>,
    %68 = vector.extract_strided_slice %5 {offsets = [0, 64], sizes = [48, 32], strides = [1, 1]} : vector<48x128xf32> to vector<48x32xf32>
    %cst_24 = arith.constant dense<0.000000e+00> : vector<48xf32>
    %69 = vector.multi_reduction <add>, %68, %cst_24 [1] : vector<48x32xf32> to vector<48xf32>
    %70 = vector.shape_cast %69 : vector<48xf32> to vector<48x1xf32>
    %cst_25 = arith.constant 3.200000e+01 : f32
    %71 = vector.broadcast %cst_25 : f32 to vector<48x1xf32>
    %72 = arith.divf %70, %71 : vector<48x1xf32>
    %73 = vector.broadcast %72 : vector<48x1xf32> to vector<48x32xf32>
    %74 = arith.subf %68, %73 : vector<48x32xf32>
    %75 = arith.mulf %74, %74 : vector<48x32xf32>
    %cst_26 = arith.constant dense<0.000000e+00> : vector<48xf32>
    %76 = vector.multi_reduction <add>, %75, %cst_26 [1] : vector<48x32xf32> to vector<48xf32>
    %77 = vector.shape_cast %76 : vector<48xf32> to vector<48x1xf32>
    %cst_27 = arith.constant 3.200000e+01 : f32
    %78 = vector.broadcast %cst_27 : f32 to vector<48x1xf32>
    %79 = arith.divf %77, %78 : vector<48x1xf32>
    %80 = vector.broadcast %72 : vector<48x1xf32> to vector<48x32xf32>
    %81 = arith.subf %68, %80 : vector<48x32xf32>
    %cst_28 = arith.constant 9.99999974E-6 : f32
    %82 = vector.broadcast %cst_28 : f32 to vector<48x1xf32>
    %83 = arith.addf %79, %82 : vector<48x1xf32>
    %84 = math.rsqrt %83 : vector<48x1xf32>
    %85 = vector.broadcast %84 : vector<48x1xf32> to vector<48x32xf32>
    %86 = arith.mulf %81, %85 : vector<48x32xf32>
    %87 = vector.broadcast %6 : vector<1x32xf32> to vector<48x32xf32>
    %88 = arith.mulf %86, %87 : vector<48x32xf32>
    %89 = vector.broadcast %7 : vector<1x32xf32> to vector<48x32xf32>
    %90 = arith.addf %88, %89 : vector<48x32xf32>
    %91 = arith.negf %90 : vector<48x32xf32>
    %92 = math.exp %91 : vector<48x32xf32>
    %cst_29 = arith.constant 1.000000e+00 : f32
    %93 = vector.broadcast %cst_29 : f32 to vector<48x32xf32>
    %94 = arith.addf %93, %92 : vector<48x32xf32>
    %95 = arith.divf %93, %94 : vector<48x32xf32>
    %96 = arith.mulf %90, %95 : vector<48x32xf32>
    %c0_30 = arith.constant 0 : index
    %c64 = arith.constant 64 : index
    %97 = vector.load %arg6[%c0_30, %c64] : memref<48x128xf32, #tpu.memory_space<vmem>>, vector<48x32xf32>
    tpu.vector_store %arg6[%c0_30, %c64], %96 {strides = array<i32>} : memref<48x128xf32, #tpu.memory_space<vmem>>, vector<48x32xf32>,
    %98 = vector.extract_strided_slice %5 {offsets = [0, 96], sizes = [48, 32], strides = [1, 1]} : vector<48x128xf32> to vector<48x32xf32>
    %cst_31 = arith.constant dense<0.000000e+00> : vector<48xf32>
    %99 = vector.multi_reduction <add>, %98, %cst_31 [1] : vector<48x32xf32> to vector<48xf32>
    %100 = vector.shape_cast %99 : vector<48xf32> to vector<48x1xf32>
    %cst_32 = arith.constant 3.200000e+01 : f32
    %101 = vector.broadcast %cst_32 : f32 to vector<48x1xf32>
    %102 = arith.divf %100, %101 : vector<48x1xf32>
    %103 = vector.broadcast %102 : vector<48x1xf32> to vector<48x32xf32>
    %104 = arith.subf %98, %103 : vector<48x32xf32>
    %105 = arith.mulf %104, %104 : vector<48x32xf32>
    %cst_33 = arith.constant dense<0.000000e+00> : vector<48xf32>
    %106 = vector.multi_reduction <add>, %105, %cst_33 [1] : vector<48x32xf32> to vector<48xf32>
    %107 = vector.shape_cast %106 : vector<48xf32> to vector<48x1xf32>
    %cst_34 = arith.constant 3.200000e+01 : f32
    %108 = vector.broadcast %cst_34 : f32 to vector<48x1xf32>
    %109 = arith.divf %107, %108 : vector<48x1xf32>
    %110 = vector.broadcast %102 : vector<48x1xf32> to vector<48x32xf32>
    %111 = arith.subf %98, %110 : vector<48x32xf32>
    %cst_35 = arith.constant 9.99999974E-6 : f32
    %112 = vector.broadcast %cst_35 : f32 to vector<48x1xf32>
    %113 = arith.addf %109, %112 : vector<48x1xf32>
    %114 = math.rsqrt %113 : vector<48x1xf32>
    %115 = vector.broadcast %114 : vector<48x1xf32> to vector<48x32xf32>
    %116 = arith.mulf %111, %115 : vector<48x32xf32>
    %117 = vector.broadcast %6 : vector<1x32xf32> to vector<48x32xf32>
    %118 = arith.mulf %116, %117 : vector<48x32xf32>
    %119 = vector.broadcast %7 : vector<1x32xf32> to vector<48x32xf32>
    %120 = arith.addf %118, %119 : vector<48x32xf32>
    %121 = arith.negf %120 : vector<48x32xf32>
    %122 = math.exp %121 : vector<48x32xf32>
    %cst_36 = arith.constant 1.000000e+00 : f32
    %123 = vector.broadcast %cst_36 : f32 to vector<48x32xf32>
    %124 = arith.addf %123, %122 : vector<48x32xf32>
    %125 = arith.divf %123, %124 : vector<48x32xf32>
    %126 = arith.mulf %120, %125 : vector<48x32xf32>
    %c0_37 = arith.constant 0 : index
    %c96 = arith.constant 96 : index
    %127 = vector.load %arg6[%c0_37, %c96] : memref<48x128xf32, #tpu.memory_space<vmem>>, vector<48x32xf32>
    tpu.vector_store %arg6[%c0_37, %c96], %126 {strides = array<i32>} : memref<48x128xf32, #tpu.memory_space<vmem>>, vector<48x32xf32>,
    return
  }
  func.func @transform_0(%arg0: i32) -> (i32, i32) {
    %c0_i32 = arith.constant 0 : i32
    %c0_i32_0 = arith.constant 0 : i32
    return %arg0, %c0_i32 : i32, i32
  }
  func.func @transform_1(%arg0: i32) -> (i32, i32) {
    %c0_i32 = arith.constant 0 : i32
    %c0_i32_0 = arith.constant 0 : i32
    %c0_i32_1 = arith.constant 0 : i32
    return %c0_i32, %c0_i32_0 : i32, i32
  }
  func.func @transform_2(%arg0: i32) -> (i32, i32) {
    %c0_i32 = arith.constant 0 : i32
    %c0_i32_0 = arith.constant 0 : i32
    %c0_i32_1 = arith.constant 0 : i32
    return %c0_i32, %c0_i32_0 : i32, i32
  }
  func.func @transform_3(%arg0: i32) -> (i32, i32) {
    %c0_i32 = arith.constant 0 : i32
    %c0_i32_0 = arith.constant 0 : i32
    %c0_i32_1 = arith.constant 0 : i32
    return %c0_i32, %c0_i32_0 : i32, i32
  }
  func.func @transform_4(%arg0: i32) -> (i32, i32) {
    %c0_i32 = arith.constant 0 : i32
    %c0_i32_0 = arith.constant 0 : i32
    %c0_i32_1 = arith.constant 0 : i32
    return %c0_i32, %c0_i32_0 : i32, i32
  }
  func.func @transform_5(%arg0: i32) -> (i32, i32) {
    %c0_i32 = arith.constant 0 : i32
    %c0_i32_0 = arith.constant 0 : i32
    return %arg0, %c0_i32 : i32, i32
  }
}

</mosaic_0001>

<bundles_post_ra>
// kernel: tpu_custom_call.1
= control target key start
LH: loop header
LB: loop body
LE: loop exit
PB: predicated region body
PF: predicated region fallthrough
CT: control target
= control target key end

     0   :  { %10 = vsyncpa [#allocation3], 0  ;;  %s2407_s0 = inlined_call_operand.hbm [shape: f32[96,128], index: 0, kind: input, shape index: {}]   ;;  %s2408_s1 = inlined_call_operand.hbm [shape: f32[128,128], index: 1, kind: input, shape index: {}]   ;;  %s2409_s2 = inlined_call_operand.vmem [shape: f32[1,128], index: 2, kind: input, shape index: {}]   ;;  %s2410_s3 = inlined_call_operand.vmem [shape: f32[1,32], index: 3, kind: input, shape index: {}]   ;;  %s2411_s4 = inlined_call_operand.vmem [shape: f32[1,32], index: 4, kind: input, shape index: {}]   ;;  %s2412_s5 = inlined_call_operand.hbm [shape: f32[96,128], index: 5, kind: output, shape index: {}]  }
   0x1   :  { %12 = vsyncpa [#allocation3 + $0x1], 0 }
   0x2   :  { %13 = vsyncpa [#allocation6], 0 }
   0x3   :  { %14 = vsyncpa [#allocation4], 0 }
   0x4   :  { %16 = vsyncpa [#allocation4 + $0x1], 0  ;;  %s1732_s18 = smov 0   ;;  %s1734_s19 = smov 0  }
   0x5   :  { %s1736_s20 = smov 0   ;;  %s1738_s21 = smov 0  }
   0x6 LB: > { %s1753_s22 = sadd.s32 4294967295, %s1690_s21   ;;  %s1202_s23 = sadd.s32 4294967294, %s1690_s21   ;;  %s1690_s21 = sphi %s1738_s21, %s2434_s21   ;;  %s1686_s20 = sphi %s1736_s20, %s2433_s20   ;;  %s1682_s19 = sphi %s1734_s19, %s2432_s19   ;;  %s1678_s18 = sphi %s1732_s18, %s2431_s18  }
   0x7   : > { %p42_p0 = scmp.ne.s32.totalorder %s1682_s19, %s1678_s18  ;;  %p2413_p1 = scmp.eq.s32.totalorder %s1753_s22, 0 }
   0x8   : > { %p156_p3 = scmp.eq.s32.totalorder %s1202_s23, 1  ;;  %p1203_p5 = scmp.ge.s32.totalorder %s1690_s21, 1 }
   0x9   : > { %p1762_p4 = por %p2413_p1, %p42_p0  ;;  %p163_p7 = scmp.lt.s32.totalorder %s1690_s21, 3 }
   0xa   : > { %p1767_p6 = por %p156_p3, %p42_p0  ;;  %s1692_s27 = smov [#allocation5]  }
   0xb   : > { %s2417_s24 = scalar_select %p1762_p4, 1, 0 }
   0xc   : > { %s2418_s25 = scalar_select %p1767_p6, 1, 0 }
   0xd   : > { %p1772_p8 = pnand %p1203_p5, %p163_p7  ;;  %s175_s28 = sshll.u32 %s1692_s27, 4  ;;  %s1776_s28 = int_to_ptr.vmem [resolvable:$true] %s175_s28 }
   0xe   : > { %s1788_s30 = sadd.s32 1, %s1690_s21   ;;  %s29_s6 = sadd.s32 1, %s1686_s20 }
   0xf   : > { %s2419_s26 = scalar_select %p1772_p8, 1, 0 }
  0x10   : > { %p1362_p9 = pneg %p1772_p8  ;;  %s26_s7 = ssub.s32 %s1690_s21, %s1788_s30 }
  0x11   : > { %s1562_s10 = scalar_lea.hbm %s2408_s1, 2048 }
  0x12   : > { %p1783_p11 = pnand %p1362_p9, %p2413_p1  ;;  %p1563_p12 = scmp.ne.s32.totalorder %s2408_s1, %s1562_s10 }
  0x13   : > { %p1569_p5 = scmp.lt.u32.totalorder %s1562_s10, %s2408_s1 }
  0x14   : > { %p1564_p13 = pneg %p1783_p11 }
  0x16   : > { %p1565_p0 = pnand %p1564_p13, %p1563_p12 }
  0x18   : > { %p1566_p3 = pneg %p1565_p0 }
  0x1a   : > { %p1571_p7 = pnand %p1569_p5, %p1566_p3 }
  0x1c   : > { %1574 = shalt.err (!%p1571_p7)
}
  0x1d   : > { %s1575_s15 = scalar_lea.vmem %s1776_s28, 2048  ;;  %p1583_p2 = scmp.lt.s32.totalorder %s1776_s28, %s1776_s28 }
  0x1e   : > { %p1576_p9 = scmp.ne.s32.totalorder %s1776_s28, %s1575_s15  ;;  %p1584_p6 = scmp.lt.s32.totalorder %s1575_s15, %s1575_s15 }
  0x20   : > { %p1578_p10 = pnand %p1576_p9, %p1564_p13  ;;  %p1585_p4 = por %p1584_p6, %p1583_p2 }
  0x22   : > { %p1579_p1 = pneg %p1578_p10 }
  0x24   : > { %p1586_p8 = pnand %p1585_p4, %p1579_p1 }
  0x26   : > { %1589 = shalt.err (!%p1586_p8)
}
  0x27   : > { %s2416_s16 = smov 128   ;;  %s1694_s17 = smov 8  }
  0x28   : > { %1365 = dma.hbm_to_vmem [thread:$0]  (!%p1783_p11), %s2408_s1, 2048, %s1776_s28, [#allocation6], %s2416_s16, %s2416_s16, %s1694_s17  }
  0x29   : > { %p27_p1 = scmp.eq.s32.totalorder %s26_s7, 0  ;;  %p36_p2 = scmp.ne.s32.totalorder %s1686_s20, %s1682_s19 }
  0x2a   : > { %p37_p4 = scmp.eq.s32.totalorder %s1690_s21, 0  ;;  %p1375_p6 = scmp.lt.s32.totalorder %s1690_s21, 2 }
  0x2b   : > { %s1822_s8 = scalar_select %p27_p1, %s1686_s20, %s29_s6  }
  0x2c   : > { %p38_p8 = por %p37_p4, %p36_p2  ;;  %p2421_p10 = scmp.eq.s32.totalorder %s1753_s22, 1 }
  0x2d   : > { %s198_s29 = sand.u32 1, %s1686_s20   ;;  %s1239_s10 = smul.u32 768, %s1690_s21 }
  0x2e   : > { %p1826_p12 = por %p2421_p10, %p36_p2  ;;  %s1352_s11 = smul.u32 48, %s198_s29 }
  0x2f   : > { %p1832_p13 = pnand %p1375_p6, %p38_p8  ;;  %s1839_s6 = scalar_lea.hbm %s2407_s0, %s1239_s10 }
  0x30   : > { %s202_s13 = scalar_lea.vmem [#allocation2], %s1352_s11  ;;  %s1843_s15 = scalar_lea.sflag [#allocation3], %s198_s29 }
  0x31   : > { %s209_s14 = sshll.u32 %s202_s13, 4  ;;  %s1590_s23 = scalar_lea.hbm %s1839_s6, 768  ;;  %s1841_s14 = int_to_ptr.vmem [resolvable:$true] %s209_s14 }
  0x32   : > { %p1591_p11 = scmp.ne.s32.totalorder %s1839_s6, %s1590_s23  ;;  %p1592_p0 = pneg %p1832_p13 }
  0x33   : > { %s1595_s28 = scalar_lea.hbm %s2407_s0, 1536  ;;  %p1596_p7 = scmp.lt.u32.totalorder %s1839_s6, %s2407_s0 }
  0x34   : > { %p1593_p3 = pnand %p1592_p0, %p1591_p11  ;;  %p1597_p9 = scmp.lt.u32.totalorder %s1595_s28, %s1590_s23 }
  0x35   : > { %p1599_p2 = scmp.lt.u32.totalorder %s1590_s23, %s1839_s6 }
  0x36   : > { %p1594_p5 = pneg %p1593_p3  ;;  %p1598_p1 = por %p1597_p9, %p1596_p7 }
  0x38   : > { %p1600_p4 = por %p1599_p2, %p1598_p1 }
  0x3a   : > { %p1601_p6 = pnand %p1600_p4, %p1594_p5 }
  0x3c   : > { %1604 = shalt.err (!%p1601_p6)
}
  0x3d   : > { %s1605_s29 = scalar_lea.vmem %s1841_s14, 768  ;;  %s1695_s11 = smov [#allocation2]  }
  0x3e   : > { %p1606_p8 = scmp.ne.s32.totalorder %s1841_s14, %s1605_s29  ;;  %s1610_s13 = sshll.u32 %s1695_s11, 4  ;;  %s1611_s13 = int_to_ptr.vmem [resolvable:$false] %s1610_s13 }
  0x3f   : > { %s1612_s16 = scalar_lea.vmem %s1611_s13, 1536  ;;  %p1613_p3 = scmp.lt.s32.totalorder %s1841_s14, %s1611_s13 }
  0x40   : > { %p1608_p10 = pnand %p1606_p8, %p1592_p0  ;;  %p1614_p7 = scmp.lt.s32.totalorder %s1612_s16, %s1605_s29 }
  0x42   : > { %p1609_p11 = pneg %p1608_p10  ;;  %p1615_p9 = por %p1614_p7, %p1613_p3 }
  0x44   : > { %p1616_p1 = pnand %p1615_p9, %p1609_p11 }
  0x46   : > { %1619 = shalt.err (!%p1616_p1)
}
  0x47   : > { %s2424_s23 = smov 128   ;;  %p2425_p0 = scmp.ne.s32.totalorder %s2419_s26, 0 }
  0x48   : > { %1369 = dma.hbm_to_vmem [thread:$0]  (!%p1832_p13), %s1839_s6, 768, %s1841_s14, %s1843_s15, %s2424_s23, %s2424_s23, %s1694_s17  }
  0x49   : > { %221 = sbr.rel (%p2425_p0) target bundleno = 1087 (0x43f), region = 40  ;;  %s1877_s27 = sand.u32 (!%p2425_p0), 1, %s1682_s19  }
  0x4a   : > { %s1353_s10 = smul.u32 (!%p2425_p0), 48, %s1877_s27  ;;  %s224_s28 = scalar_lea.sflag (!%p2425_p0), [#allocation3], %s1877_s27 }
  0x4b   : > { %p2426_p5 = scmp.ne.s32.totalorder (!%p2425_p0), %s2417_s24, 0 }
  0x4c   : > { %s1883_s12 = scalar_lea.vmem (!%p2425_p0), [#allocation2], %s1353_s10 }
  0x50   : > { %1665 = dma.done.wait (%p2426_p5), %s224_s28, 768  }
  0x51   : > { %1667 = vsyncadd (%p2426_p5), %s224_s28, 4294966528  ;;  %p2427_p13 = scmp.eq.s32.totalorder %s1753_s22, 0 }
  0x53   : > { %1669 = dma.done.wait (%p2427_p13), [#allocation6], 2048   ;;  %p2428_p2 = pmov %p2427_p13 }
  0x54   : > { %v266_v0 = vld [vmem:[#allocation5] sm:$0xff]  ;;  %v267_v1 = vld [vmem:[#allocation5 + $0x8] sm:$0xff]  ;;  %v268_v2 = vld [vmem:[#allocation5 + $0x10] sm:$0xff]  ;;  %vm386_vm0 = vcmask 261120   ;;  %s1696_s17 = smov 96   ;;  %s1697_s6 = smov 64  }
  0x55   : > { %1671 = vsyncadd (%p2428_p2), [#allocation6], 4294965248  ;;  %v1304_v3 = vpack.c.bf16 %v267_v1, %v266_v0  ;;  %v269_v4 = vld [vmem:[#allocation5 + $0x18] sm:$0xff]  ;;  %v270_v6 = vld [vmem:[#allocation5 + $0x20] sm:$0xff]  ;;  %s1698_s14 = smov 32   ;;  %s2146_s13 = scalar_lea.vmem [#allocation7], %s1353_s10 }
  0x56   : > { %v1308_v5 = vpack.c.bf16 %v269_v4, %v268_v2  ;;  %v271_v7 = vld [vmem:[#allocation5 + $0x28] sm:$0xff]  ;;  %v260_v9 = vld [vmem:[%s1883_s12] sm:$0xff]  ;;  %v273_v11 = vld [vmem:[#allocation5 + $0x38] sm:$0xff]  ;;  %vm724_vm1 = vcmask 523520   ;;  %vm911_vm2 = vcmask 785920   ;;  %vm1098_vm3 = vcmask 1048320  }
  0x57   : > { %1305 = vmatprep.subr.bf16.mxu0 %v1304_v3  ;;  %1336 = vmatprep.subr.bf16.mxu1 %v1304_v3  ;;  %v1312_v8 = vpack.c.bf16 %v271_v7, %v270_v6  ;;  %v272_v10 = vld [vmem:[#allocation5 + $0x30] sm:$0xff]  ;;  %v274_v14 = vld [vmem:[#allocation5 + $0x40] sm:$0xff]  ;;  %v275_v15 = vld [vmem:[#allocation5 + $0x48] sm:$0xff]  ;;  %s1240_s16 = smul.u32 768, %s1753_s22  ;;  %s1119_s23 = sshll.u32 %s2146_s13, 4  ;;  %s2359_s23 = int_to_ptr.vmem [resolvable:$true] %s1119_s23 }
  0x58   : > { %1307 = vmatpush3.bf16.msra.mxu0 %v1304_v3  ;;  %1344 = vmatpush3.bf16.msra.mxu1 %v1304_v3  ;;  %v262_v12 = vld [vmem:[%s1883_s12 + $0x10] sm:$0xff]  ;;  %v1316_v13 = vpack.c.bf16 %v273_v11, %v272_v10  ;;  %v1320_v16 = vpack.c.bf16 %v275_v15, %v274_v14  ;;  %v277_v18 = vld [vmem:[#allocation5 + $0x58] sm:$0xff]  ;;  %v279_v21 = vld [vmem:[#allocation5 + $0x68] sm:$0xff]  ;;  %s1106_s22 = scalar_lea.sflag [#allocation4], %s1877_s27  ;;  %s1620_s24 = scalar_lea.vmem %s2359_s23, 768 }
  0x59   : > { %1309 = vmatprep.subr.bf16.mxu0 %v1308_v5  ;;  %1337 = vmatprep.subr.bf16.mxu1 %v1308_v5  ;;  %v276_v17 = vld [vmem:[#allocation5 + $0x50] sm:$0xff]  ;;  %v278_v20 = vld [vmem:[#allocation5 + $0x60] sm:$0xff]  ;;  %v281_v24 = vld [vmem:[#allocation5 + $0x78] sm:$0xff]  ;;  %p1621_p4 = scmp.ne.s32.totalorder %s2359_s23, %s1620_s24  ;;  %s1699_s26 = smov [#allocation7]  }
  0x5a   : > { %1295 = vmatprep.mubr.f32.mxu0 %v260_v9  ;;  %1298 = vmatprep.mubr.f32.mxu1 %v262_v12  ;;  %v1324_v19 = vpack.c.bf16 %v277_v18, %v276_v17  ;;  %v1328_v22 = vpack.c.bf16 %v279_v21, %v278_v20  ;;  %v280_v23 = vld [vmem:[#allocation5 + $0x70] sm:$0xff]  ;;  %v261_v26 = vld [vmem:[%s1883_s12 + $0x8] sm:$0xff]  ;;  %v263_v27 = vld [vmem:[%s1883_s12 + $0x18] sm:$0xff] }
  0x5b   : > { %v1332_v25 = vpack.c.bf16 %v281_v24, %v280_v23  ;;  %v264_v28 = vld [vmem:[%s1883_s12 + $0x20] sm:$0xff]  ;;  %v265_v29 = vld [vmem:[%s1883_s12 + $0x28] sm:$0xff]  ;;  %s2356_s12 = scalar_lea.hbm %s2412_s5, %s1240_s16  ;;  %p1622_p6 = pnand %p1621_p4, %p1826_p12 }
  0x5c   : > { %1311 = vmatpush3.bf16.msra.mxu0 %v1308_v5  ;;  %1345 = vmatpush3.bf16.msra.mxu1 %v1308_v5  ;;  %v1209_v30 = vld [vmem:[%s2409_s2] ss:$0 sm:$0xff] }
  0x5d   : > { %1313 = vmatprep.subr.bf16.mxu0 %v1312_v8  ;;  %1338 = vmatprep.subr.bf16.mxu1 %v1312_v8  ;;  %p1623_p8 = pneg %p1622_p6 }
  0x60   : > { %1315 = vmatpush3.bf16.msra.mxu0 %v1312_v8  ;;  %1346 = vmatpush3.bf16.msra.mxu1 %v1312_v8 }
  0x61   : > { %1317 = vmatprep.subr.bf16.mxu0 %v1316_v13  ;;  %1339 = vmatprep.subr.bf16.mxu1 %v1316_v13 }
  0x64   : > { %1319 = vmatpush3.bf16.msra.mxu0 %v1316_v13  ;;  %1347 = vmatpush3.bf16.msra.mxu1 %v1316_v13 }
  0x65   : > { %1321 = vmatprep.subr.bf16.mxu0 %v1320_v16  ;;  %1340 = vmatprep.subr.bf16.mxu1 %v1320_v16 }
  0x68   : > { %1323 = vmatpush3.bf16.msra.mxu0 %v1320_v16  ;;  %1348 = vmatpush3.bf16.msra.mxu1 %v1320_v16 }
  0x69   : > { %1325 = vmatprep.subr.bf16.mxu0 %v1324_v19  ;;  %1341 = vmatprep.subr.bf16.mxu1 %v1324_v19 }
  0x6c   : > { %1327 = vmatpush3.bf16.msra.mxu0 %v1324_v19  ;;  %1349 = vmatpush3.bf16.msra.mxu1 %v1324_v19 }
  0x6d   : > { %1329 = vmatprep.subr.bf16.mxu0 %v1328_v22  ;;  %1342 = vmatprep.subr.bf16.mxu1 %v1328_v22 }
  0x70   : > { %1331 = vmatpush3.bf16.msra.mxu0 %v1328_v22  ;;  %1350 = vmatpush3.bf16.msra.mxu1 %v1328_v22 }
  0x71   : > { %1333 = vmatprep.subr.bf16.mxu0 %v1332_v25  ;;  %1343 = vmatprep.subr.bf16.mxu1 %v1332_v25 }
  0x74   : > { %1335 = vmatpush3.bf16.msra.mxu0 %v1332_v25  ;;  %1351 = vmatpush3.bf16.msra.mxu1 %v1332_v25 }
  0x77   : > { %1296 = vmatmul.mubr.f32.vlgmr.msra.gmra.mrb[0].mxu0 %v261_v26  ;;  %1299 = vmatmul.mubr.f32.vlgmr.msra.gmra.mrb[0].mxu1 %v263_v27 }
  0x78   : > { %1301 = vmatprep.mubr.f32.mxu1 %v264_v28 }
  0x7b   : > { %1302 = vmatmul.mubr.f32.gmra.mrb[2].mxu1 %v265_v29 }
 0x14a   : > { %v1297_v31 = vpop.f32.mrb[0].mxu0  ;;  %v1300_v32 = vpop.f32.mrb[0].mxu1 }
 0x14b   : > { %v1902_v33 = vadd.f32 %v1297_v31, %v1209_v30  ;;  %v355_v34 = vpop.f32.mrb[1].mxu0  ;;  %v365_v35 = vpop.f32.mrb[1].mxu1  ;;  %v1904_v36 = vadd.f32 %v1300_v32, %v1209_v30 }
 0x14c   : > { %v1924_v42 = vadd.f32 %v1209_v30, %v355_v34  ;;  %v1930_v43 = vadd.f32 %v1209_v30, %v365_v35 }
 0x14d   : > { %546 = vrot.lane.b32.xlu1 %v1902_v33, %s1696_s17  ;;  %v390_v37 = vsel %vm386_vm0, %v1902_v33, 0.0  ;;  %v396_v44 = vsel %vm386_vm0, %v1904_v36, 0.0 }
 0x14e   : > { %391 = vadd.xlane.f32.xlu0 %v390_v37  ;;  %v1303_v38 = vpop.f32.mrb[2].mxu1  ;;  %v387_v45 = vsel %vm386_vm0, %v1924_v42, 0.0  ;;  %v393_v46 = vsel %vm386_vm0, %v1930_v43, 0.0 }
 0x14f   : > { %v1910_v39 = vadd.f32 %v1303_v38, %v1209_v30  ;;  %v375_v40 = vpop.f32.mrb[3].mxu1 }
 0x150   : > { %v1912_v41 = vadd.f32 %v1209_v30, %v375_v40 }
 0x151   : > { %550 = vrot.lane.b32.xlu1 %v1904_v36, %s1696_s17  ;;  %v402_v7 = vsel %vm386_vm0, %v1910_v39, 0.0 }
 0x152   : > { %v399_v49 = vsel %vm386_vm0, %v1912_v41, 0.0 }
 0x155   : > { %733 = vrot.lane.b32.xlu1 %v1902_v33, %s1697_s6 }
 0x159   : > { %737 = vrot.lane.b32.xlu1 %v1904_v36, %s1697_s6 }
 0x15d   : > { %920 = vrot.lane.b32.xlu1 %v1902_v33, %s1698_s14 }
 0x161   : > { %924 = vrot.lane.b32.xlu1 %v1904_v36, %s1698_s14 }
 0x164   : > { %544 = vrot.lane.b32.xlu0 %v1924_v42, %s1696_s17 }
 0x168   : > { %731 = vrot.lane.b32.xlu0 %v1924_v42, %s1697_s6 }
 0x16c   : > { %735 = vrot.lane.b32.xlu0 %v1930_v43, %s1697_s6 }
 0x170   : > { %918 = vrot.lane.b32.xlu0 %v1924_v42, %s1698_s14 }
 0x174   : > { %922 = vrot.lane.b32.xlu0 %v1930_v43, %s1698_s14 }
 0x185   : > { %397 = vadd.xlane.f32.xlu1 %v396_v44 }
 0x193   : > { %388 = vadd.xlane.f32.xlu0 %v387_v45 }
 0x196   : > { %548 = vrot.lane.b32.xlu1 %v1930_v43, %s1696_s17 }
 0x1a9   : > { %552 = vrot.lane.b32.xlu0 %v1912_v41, %s1696_s17 }
 0x1ad   : > { %739 = vrot.lane.b32.xlu0 %v1912_v41, %s1697_s6 }
 0x1b1   : > { %926 = vrot.lane.b32.xlu0 %v1912_v41, %s1698_s14 }
 0x1ba   : > { %394 = vadd.xlane.f32.xlu1 %v393_v46 }
 0x1bf   : > { %v547_v47 = vpop.permute.xlu1 %546 }
 0x1c0   : > { %v565_v51 = vsel %vm386_vm0, %v547_v47, 0.0 }
 0x1c3   : > { %v551_v48 = vpop.permute.xlu1 %550 }
 0x1c4   : > { %v571_v52 = vsel %vm386_vm0, %v551_v48, 0.0 }
 0x1c7   : > { %v734_v50 = vpop.permute.xlu1 %733 }
 0x1c8   : > { %v752_v54 = vsel %vm386_vm0, %v734_v50, 0.0 }
 0x1cb   : > { %554 = vrot.lane.b32.xlu1 %v1910_v39, %s1696_s17  ;;  %v738_v53 = vpop.permute.xlu1 %737 }
 0x1cc   : > { %v758_v56 = vsel %vm386_vm0, %v738_v53, 0.0 }
 0x1cf   : > { %741 = vrot.lane.b32.xlu1 %v1910_v39, %s1697_s6  ;;  %v921_v55 = vpop.permute.xlu1 %920 }
 0x1d0   : > { %400 = vadd.xlane.f32.xlu0 %v399_v49  ;;  %v939_v57 = vsel %vm386_vm0, %v921_v55, 0.0 }
 0x1d3   : > { %928 = vrot.lane.b32.xlu1 %v1910_v39, %s1698_s14  ;;  %v925_v58 = vpop.permute.xlu1 %924 }
 0x1d4   : > { %566 = vadd.xlane.f32.xlu0 %v565_v51  ;;  %v945_v60 = vsel %vm386_vm0, %v925_v58, 0.0 }
 0x1d8   : > { %572 = vadd.xlane.f32.xlu0 %v571_v52 }
 0x1db   : > { %v392_v59 = vpop.xlane.xlu0 %391 }
 0x1dc   : > { %753 = vadd.xlane.f32.xlu0 %v752_v54  ;;  %v407_v13 = vmul.f32 0.03125, %v392_v59 }
 0x1de   : > { %v1976_v16 = vsub.f32 %v1902_v33, %v407_v13 }
 0x1df   : > { %v545_v61 = vpop.permute.xlu0 %544 }
 0x1e0   : > { %759 = vadd.xlane.f32.xlu0 %v758_v56  ;;  %v562_v63 = vsel %vm386_vm0, %v545_v61, 0.0  ;;  %v419_v22 = vmul.f32 %v1976_v16, %v1976_v16 }
 0x1e2   : > { %v427_v23 = vsel %vm386_vm0, %v419_v22, 0.0 }
 0x1e3   : > { %v732_v62 = vpop.permute.xlu0 %731 }
 0x1e4   : > { %940 = vadd.xlane.f32.xlu0 %v939_v57  ;;  %v749_v1 = vsel %vm386_vm0, %v732_v62, 0.0 }
 0x1e7   : > { %v736_v0 = vpop.permute.xlu0 %735 }
 0x1e8   : > { %946 = vadd.xlane.f32.xlu0 %v945_v60  ;;  %v755_v3 = vsel %vm386_vm0, %v736_v0, 0.0 }
 0x1eb   : > { %v919_v2 = vpop.permute.xlu0 %918 }
 0x1ec   : > { %v936_v4 = vsel %vm386_vm0, %v919_v2, 0.0 }
 0x1ef   : > { %v923_v5 = vpop.permute.xlu0 %922 }
 0x1f0   : > { %v942_v6 = vsel %vm386_vm0, %v923_v5, 0.0 }
 0x1f7   : > { %563 = vadd.xlane.f32.xlu1 %v562_v63 }
 0x1fb   : > { %750 = vadd.xlane.f32.xlu1 %v749_v1 }
 0x1ff   : > { %756 = vadd.xlane.f32.xlu1 %v755_v3 }
 0x203   : > { %937 = vadd.xlane.f32.xlu1 %v936_v4 }
 0x207   : > { %943 = vadd.xlane.f32.xlu1 %v942_v6 }
 0x20b   : > { %403 = vadd.xlane.f32.xlu1 %v402_v7 }
 0x212   : > { %v398_v8 = vpop.xlane.xlu1 %397 }
 0x213   : > { %v409_v17 = vmul.f32 0.03125, %v398_v8 }
 0x215   : > { %v1980_v20 = vsub.f32 %v1904_v36, %v409_v17 }
 0x216   : > { %v549_v9 = vpop.permute.xlu1 %548 }
 0x217   : > { %v568_v10 = vsel %vm386_vm0, %v549_v9, 0.0  ;;  %v421_v24 = vmul.f32 %v1980_v20, %v1980_v20 }
 0x218   : > { %569 = vadd.xlane.f32.xlu0 %v568_v10 }
 0x219   : > { %v433_v25 = vsel %vm386_vm0, %v421_v24, 0.0 }
 0x220   : > { %v389_v11 = vpop.xlane.xlu0 %388 }
 0x221   : > { %v406_v28 = vmul.f32 0.03125, %v389_v11 }
 0x223   : > { %v1991_v31 = vsub.f32 %v1924_v42, %v406_v28 }
 0x224   : > { %v553_v12 = vpop.permute.xlu0 %552 }
 0x225   : > { %v574_v14 = vsel %vm386_vm0, %v553_v12, 0.0  ;;  %v418_v40 = vmul.f32 %v1991_v31, %v1991_v31 }
 0x226   : > { %575 = vadd.xlane.f32.xlu1 %v574_v14 }
 0x227   : > { %v424_v44 = vsel %vm386_vm0, %v418_v40, 0.0 }
 0x228   : > { %v740_v15 = vpop.permute.xlu0 %739 }
 0x229   : > { %v761_v18 = vsel %vm386_vm0, %v740_v15, 0.0 }
 0x22a   : > { %762 = vadd.xlane.f32.xlu1 %v761_v18 }
 0x22c   : > { %v927_v19 = vpop.permute.xlu0 %926 }
 0x22d   : > { %v948_v21 = vsel %vm386_vm0, %v927_v19, 0.0 }
 0x22e   : > { %949 = vadd.xlane.f32.xlu1 %v948_v21 }
 0x232   : > { %428 = vadd.xlane.f32.xlu1 %v427_v23 }
 0x236   : > { %434 = vadd.xlane.f32.xlu1 %v433_v25 }
 0x247   : > { %v395_v26 = vpop.xlane.xlu1 %394 }
 0x248   : > { %v408_v32 = vmul.f32 0.03125, %v395_v26 }
 0x24a   : > { %v1995_v37 = vsub.f32 %v1930_v43, %v408_v32 }
 0x24b   : > { %v555_v27 = vpop.permute.xlu1 %554 }
 0x24c   : > { %v577_v29 = vsel %vm386_vm0, %v555_v27, 0.0  ;;  %v420_v45 = vmul.f32 %v1995_v37, %v1995_v37 }
 0x24d   : > { %578 = vadd.xlane.f32.xlu0 %v577_v29 }
 0x24e   : > { %v430_v46 = vsel %vm386_vm0, %v420_v45, 0.0 }
 0x24f   : > { %v742_v30 = vpop.permute.xlu1 %741 }
 0x250   : > { %v764_v34 = vsel %vm386_vm0, %v742_v30, 0.0 }
 0x251   : > { %765 = vadd.xlane.f32.xlu0 %v764_v34 }
 0x253   : > { %v929_v35 = vpop.permute.xlu1 %928 }
 0x254   : > { %v951_v38 = vsel %vm386_vm0, %v929_v35, 0.0 }
 0x255   : > { %952 = vadd.xlane.f32.xlu0 %v951_v38 }
 0x259   : > { %425 = vadd.xlane.f32.xlu0 %v424_v44 }
 0x25d   : > { %431 = vadd.xlane.f32.xlu0 %v430_v46  ;;  %v401_v47 = vpop.xlane.xlu0 %400  ;;  %v2077_v46 = vld [vmem:[%s2410_s3] ss:$0 sm:$0xff] }
 0x25e   : > { %v410_v48 = vmul.f32 0.03125, %v401_v47 }
 0x260   : > { %v2005_v49 = vsub.f32 %v1912_v41, %v410_v48 }
 0x261   : > { %v567_v59 = vpop.xlane.xlu0 %566 }
 0x262   : > { %v422_v50 = vmul.f32 %v2005_v49, %v2005_v49  ;;  %v581_v5 = vmul.f32 0.03125, %v567_v59 }
 0x264   : > { %v436_v51 = vsel %vm386_vm0, %v422_v50, 0.0  ;;  %v2025_v7 = vsub.f32 %v1902_v33, %v581_v5 }
 0x265   : > { %437 = vadd.xlane.f32.xlu0 %v436_v51  ;;  %v573_v61 = vpop.xlane.xlu0 %572 }
 0x266   : > { %v583_v8 = vmul.f32 0.03125, %v573_v61  ;;  %v593_v11 = vmul.f32 %v2025_v7, %v2025_v7 }
 0x268   : > { %v2028_v9 = vsub.f32 %v1904_v36, %v583_v8 }
 0x269   : > { %v754_v2 = vpop.xlane.xlu0 %753 }
 0x26a   : > { %v768_v10 = vmul.f32 0.03125, %v754_v2  ;;  %v595_v17 = vmul.f32 %v2028_v9, %v2028_v9 }
 0x26c   : > { %v2036_v13 = vsub.f32 %v1902_v33, %v768_v10 }
 0x26d   : > { %v760_v4 = vpop.xlane.xlu0 %759 }
 0x26e   : > { %v770_v14 = vmul.f32 0.03125, %v760_v4  ;;  %v780_v26 = vmul.f32 %v2036_v13, %v2036_v13 }
 0x270   : > { %v2045_v23 = vsub.f32 %v1904_v36, %v770_v14 }
 0x271   : > { %v941_v6 = vpop.xlane.xlu0 %940 }
 0x272   : > { %v955_v18 = vmul.f32 0.03125, %v941_v6  ;;  %v782_v34 = vmul.f32 %v2045_v23, %v2045_v23 }
 0x274   : > { %v2052_v27 = vsub.f32 %v1902_v33, %v955_v18 }
 0x275   : > { %v2032_v12 = vpop.xlane.xlu0 %946 }
 0x276   : > { %v967_v33 = vmul.f32 %v2052_v27, %v2052_v27 }
 0x284   : > { %v564_v52 = vpop.xlane.xlu1 %563 }
 0x285   : > { %v580_v53 = vmul.f32 0.03125, %v564_v52 }
 0x287   : > { %v2011_v54 = vsub.f32 %v1924_v42, %v580_v53 }
 0x288   : > { %v751_v55 = vpop.xlane.xlu1 %750 }
 0x289   : > { %v592_v56 = vmul.f32 %v2011_v54, %v2011_v54  ;;  %v767_v29 = vmul.f32 0.03125, %v751_v55 }
 0x28b   : > { %604 = vrot.lane.b32.xlu0 %v592_v56, %s1696_s17  ;;  %v2070_v35 = vsub.f32 %v1924_v42, %v767_v29 }
 0x28c   : > { %v757_v57 = vpop.xlane.xlu1 %756 }
 0x28d   : > { %v769_v38 = vmul.f32 0.03125, %v757_v57  ;;  %v779_v52 = vmul.f32 %v2070_v35, %v2070_v35 }
 0x28f   : > { %v2083_v48 = vsub.f32 %v1930_v43, %v769_v38 }
 0x290   : > { %v938_v58 = vpop.xlane.xlu1 %937 }
 0x291   : > { %v954_v50 = vmul.f32 0.03125, %v938_v58  ;;  %v781_v57 = vmul.f32 %v2083_v48, %v2083_v48 }
 0x293   : > { %v2089_v56 = vsub.f32 %v1924_v42, %v954_v50 }
 0x294   : > { %v2016_v60 = vpop.xlane.xlu1 %943 }
 0x295   : > { %v966_v58 = vmul.f32 %v2089_v56, %v2089_v56  ;;  %v956_v14 = vmul.f32 0.03125, %v2016_v60 }
 0x298   : > { %v404_v62 = vpop.xlane.xlu1 %403 }
 0x299   : > { %v411_v63 = vmul.f32 0.03125, %v404_v62  ;;  %v2101_v62 = vld [vmem:[%s2411_s4] ss:$0 sm:$0xff] }
 0x29b   : > { %v2019_v0 = vsub.f32 %v1910_v39, %v411_v63 }
 0x29d   : > { %v423_v1 = vmul.f32 %v2019_v0, %v2019_v0 }
 0x29f   : > { %v439_v3 = vsel %vm386_vm0, %v423_v1, 0.0 }
 0x2a0   : > { %440 = vadd.xlane.f32.xlu1 %v439_v3 }
 0x2a5   : > { %v570_v19 = vpop.xlane.xlu0 %569 }
 0x2a6   : > { %v582_v24 = vmul.f32 0.03125, %v570_v19 }
 0x2a8   : > { %v2059_v30 = vsub.f32 %v1930_v43, %v582_v24  ;;  %v957_v24 = vmul.f32 0.03125, %v2032_v12 }
 0x2aa   : > { %v594_v44 = vmul.f32 %v2059_v30, %v2059_v30 }
 0x2b1   : > { %606 = vrot.lane.b32.xlu1 %v593_v11, %s1696_s17 }
 0x2b3   : > { %v576_v15 = vpop.xlane.xlu1 %575 }
 0x2b4   : > { %v584_v21 = vmul.f32 0.03125, %v576_v15 }
 0x2b5   : > { %610 = vrot.lane.b32.xlu1 %v595_v17, %s1696_s17 }
 0x2b6   : > { %v2042_v22 = vsub.f32 %v1912_v41, %v584_v21 }
 0x2b7   : > { %v2047_v25 = vpop.xlane.xlu1 %762 }
 0x2b8   : > { %v596_v28 = vmul.f32 %v2042_v22, %v2042_v22 }
 0x2b9   : > { %793 = vrot.lane.b32.xlu1 %v780_v26, %s1697_s6  ;;  %v2120_v26 = vsub.f32 %v1930_v43, %v956_v14 }
 0x2ba   : > { %612 = vrot.lane.b32.xlu0 %v596_v28, %s1696_s17 }
 0x2bb   : > { %v2061_v32 = vpop.xlane.xlu1 %949  ;;  %v968_v12 = vmul.f32 %v2120_v26, %v2120_v26 }
 0x2bd   : > { %797 = vrot.lane.b32.xlu1 %v782_v34, %s1697_s6 }
 0x2be   : > { %980 = vrot.lane.b32.xlu0 %v967_v33, %s1698_s14  ;;  %v2126_v33 = vsub.f32 %v1904_v36, %v957_v24 }
 0x2bf   : > { %v429_v40 = vpop.xlane.xlu1 %428 }
 0x2c0   : > { %v443_v45 = vmul.f32 0.03125, %v429_v40  ;;  %v969_v36 = vmul.f32 %v2126_v33, %v2126_v33 }
 0x2c1   : > { %608 = vrot.lane.b32.xlu1 %v594_v44, %s1696_s17  ;;  %v771_v44 = vmul.f32 0.03125, %v2047_v25 }
 0x2c2   : > { %v449_v47 = vadd.f32 1e-05, %v443_v45  ;;  %664 = vrot.lane.b32.xlu0 %v2077_v46, %s1698_s14 }
 0x2c3   : > { %v435_v51 = vpop.xlane.xlu1 %434 }
 0x2c4   : > { %1418 = vrsqrt.f32 %v449_v47  ;;  %v445_v53 = vmul.f32 0.03125, %v435_v51 }
 0x2c5   : > { %791 = vrot.lane.b32.xlu1 %v779_v52, %s1697_s6 }
 0x2c6   : > { %v451_v55 = vadd.f32 1e-05, %v445_v53  ;;  %v2139_v53 = vsub.f32 %v1912_v41, %v771_v44 }
 0x2c8   : > { %1420 = vrsqrt.f32 %v451_v55  ;;  %v958_v55 = vmul.f32 0.03125, %v2061_v32 }
 0x2c9   : > { %795 = vrot.lane.b32.xlu1 %v781_v57, %s1697_s6 }
 0x2cd   : > { %978 = vrot.lane.b32.xlu1 %v966_v58, %s1698_s14 }
 0x2ce   : > { %v1419_v59 = vpop.eup %1418 }
 0x2cf   : > { %v461_v61 = vmul.f32 %v1419_v59, %v1976_v16  ;;  %v2152_v59 = vsub.f32 %v1912_v41, %v958_v55 }
 0x2d1   : > { %v473_v42 = vmul.f32 %v2077_v46, %v461_v61 }
 0x2d2   : > { %v1421_v63 = vpop.eup %1420 }
 0x2d3   : > { %v485_v1 = vadd.f32 %v2101_v62, %v473_v42  ;;  %v463_v2 = vmul.f32 %v1421_v63, %v1980_v20  ;;  %v783_v42 = vmul.f32 %v2139_v53, %v2139_v53 }
 0x2d5   : > { %v1213_v3 = vmul.f32 -1.442695, %v485_v1  ;;  %v475_v4 = vmul.f32 %v2077_v46, %v463_v2 }
 0x2d7   : > { %1422 = vpow2.f32 %v1213_v3  ;;  %v487_v5 = vadd.f32 %v2101_v62, %v475_v4  ;;  %v970_v3 = vmul.f32 %v2152_v59, %v2152_v59 }
 0x2d9   : > { %v1215_v6 = vmul.f32 -1.442695, %v487_v5 }
 0x2da   : > { %v579_v16 = vpop.xlane.xlu0 %578 }
 0x2db   : > { %1424 = vpow2.f32 %v1215_v6  ;;  %v585_v8 = vmul.f32 0.03125, %v579_v16 }
 0x2dd   : > { %v2109_v10 = vsub.f32 %v1910_v39, %v585_v8 }
 0x2de   : > { %v766_v11 = vpop.xlane.xlu0 %765 }
 0x2df   : > { %v772_v15 = vmul.f32 0.03125, %v766_v11  ;;  %v597_v20 = vmul.f32 %v2109_v10, %v2109_v10 }
 0x2e1   : > { %v1423_v17 = vpop.eup %1422  ;;  %v2115_v18 = vsub.f32 %v1910_v39, %v772_v15  ;;  %614 = vrot.lane.b32.xlu1 %v597_v20, %s1696_s17 }
 0x2e2   : > { %v509_v19 = vadd.f32 1.0, %v1423_v17  ;;  %v953_v21 = vpop.xlane.xlu0 %952 }
 0x2e3   : > { %v784_v60 = vmul.f32 %v2115_v18, %v2115_v18  ;;  %v959_v38 = vmul.f32 0.03125, %v953_v21 }
 0x2e4   : > { %1426 = vrcp.f32 %v509_v19 }
 0x2e5   : > { %v1425_v28 = vpop.eup %1424  ;;  %801 = vrot.lane.b32.xlu1 %v784_v60, %s1697_s6  ;;  %v2133_v47 = vsub.f32 %v1910_v39, %v959_v38 }
 0x2e6   : > { %v511_v29 = vadd.f32 1.0, %v1425_v28  ;;  %v426_v34 = vpop.xlane.xlu0 %425 }
 0x2e7   : > { %v442_v40 = vmul.f32 0.03125, %v426_v34  ;;  %v971_v39 = vmul.f32 %v2133_v47, %v2133_v47 }
 0x2e8   : > { %1428 = vrcp.f32 %v511_v29 }
 0x2e9   : > { %v448_v43 = vadd.f32 1e-05, %v442_v40  ;;  %982 = vrot.lane.b32.xlu1 %v968_v12, %s1698_s14 }
 0x2ea   : > { %v432_v45 = vpop.xlane.xlu0 %431 }
 0x2eb   : > { %1430 = vrsqrt.f32 %v448_v43  ;;  %v444_v50 = vmul.f32 0.03125, %v432_v45 }
 0x2ed   : > { %v450_v51 = vadd.f32 1e-05, %v444_v50  ;;  %984 = vrot.lane.b32.xlu1 %v969_v36, %s1698_s14 }
 0x2ee   : > { %v1427_v52 = vpop.eup %1426 }
 0x2ef   : > { %v527_v57 = vmul.f32 %v1427_v52, %v485_v1  ;;  %1432 = vrsqrt.f32 %v450_v51 }
 0x2f1   : > { %533 = vst.msk [vmem:[%s2146_s13 + $0x8] sm:$0xff] %vm386_vm0, %v527_v57  ;;  %988 = vrot.lane.b32.xlu1 %v971_v39, %s1698_s14 }
 0x2f2   : > { %v1429_v25 = vpop.eup %1428  ;;  %v438_v58 = vpop.xlane.xlu0 %437 }
 0x2f3   : > { %v529_v32 = vmul.f32 %v1429_v25, %v487_v5  ;;  %v446_v61 = vmul.f32 0.03125, %v438_v58 }
 0x2f5   : > { %v1431_v63 = vpop.eup %1430  ;;  %535 = vst.msk [vmem:[%s2146_s13 + $0x18] sm:$0xff] %vm386_vm0, %v529_v32  ;;  %v452_v1 = vadd.f32 1e-05, %v446_v61  ;;  %799 = vrot.lane.b32.xlu1 %v783_v42, %s1697_s6 }
 0x2f6   : > { %v460_v2 = vmul.f32 %v1431_v63, %v1991_v31 }
 0x2f7   : > { %1434 = vrsqrt.f32 %v452_v1 }
 0x2f8   : > { %v472_v41 = vmul.f32 %v2077_v46, %v460_v2 }
 0x2f9   : > { %v1433_v4 = vpop.eup %1432  ;;  %986 = vrot.lane.b32.xlu1 %v970_v3, %s1698_s14 }
 0x2fa   : > { %v484_v5 = vadd.f32 %v2101_v62, %v472_v41  ;;  %v462_v6 = vmul.f32 %v1433_v4, %v1995_v37 }
 0x2fc   : > { %v1212_v16 = vmul.f32 -1.442695, %v484_v5  ;;  %v474_v8 = vmul.f32 %v2077_v46, %v462_v6 }
 0x2fd   : > { %v605_v11 = vpop.permute.xlu0 %604  ;;  %851 = vrot.lane.b32.xlu1 %v2077_v46, %s1697_s6 }
 0x2fe   : > { %1436 = vpow2.f32 %v1212_v16  ;;  %v486_v31 = vadd.f32 %v2101_v62, %v474_v8  ;;  %v622_v14 = vsel %vm386_vm0, %v605_v11, 0.0 }
 0x2ff   : > { %623 = vadd.xlane.f32.xlu0 %v622_v14 }
 0x300   : > { %v1214_v15 = vmul.f32 -1.442695, %v486_v31 }
 0x301   : > { %v1435_v20 = vpop.eup %1434  ;;  %673 = vrot.lane.b32.xlu1 %v2101_v62, %s1698_s14 }
 0x302   : > { %1438 = vpow2.f32 %v1214_v15  ;;  %v464_v37 = vmul.f32 %v1435_v20, %v2005_v49 }
 0x304   : > { %v476_v17 = vmul.f32 %v2077_v46, %v464_v37 }
 0x306   : > { %v488_v19 = vadd.f32 %v2101_v62, %v476_v17 }
 0x308   : > { %v1437_v21 = vpop.eup %1436  ;;  %v1216_v24 = vmul.f32 -1.442695, %v488_v19 }
 0x309   : > { %v508_v60 = vadd.f32 1.0, %v1437_v21 }
 0x30a   : > { %1440 = vpow2.f32 %v1216_v24 }
 0x30b   : > { %1442 = vrcp.f32 %v508_v60 }
 0x30c   : > { %v1439_v28 = vpop.eup %1438 }
 0x30d   : > { %v510_v29 = vadd.f32 1.0, %v1439_v28 }
 0x30f   : > { %1444 = vrcp.f32 %v510_v29 }
 0x314   : > { %v1441_v34 = vpop.eup %1440 }
 0x315   : > { %v1443_v38 = vpop.eup %1442  ;;  %v512_v40 = vadd.f32 1.0, %v1441_v34 }
 0x316   : > { %v526_v12 = vmul.f32 %v1443_v38, %v484_v5 }
 0x317   : > { %1446 = vrcp.f32 %v512_v40 }
 0x318   : > { %532 = vst.msk [vmem:[%s2146_s13] sm:$0xff] %vm386_vm0, %v526_v12 }
 0x319   : > { %v1445_v49 = vpop.eup %1444 }
 0x31a   : > { %v528_v43 = vmul.f32 %v1445_v49, %v486_v31 }
 0x31c   : > { %534 = vst.msk [vmem:[%s2146_s13 + $0x10] sm:$0xff] %vm386_vm0, %v528_v43 }
 0x321   : > { %v1447_v44 = vpop.eup %1446 }
 0x322   : > { %v530_v45 = vmul.f32 %v1447_v44, %v488_v19 }
 0x324   : > { %536 = vst.msk [vmem:[%s2146_s13 + $0x20] sm:$0xff] %vm386_vm0, %v530_v45 }
 0x32c   : > { %v613_v25 = vpop.permute.xlu0 %612 }
 0x32d   : > { %v441_v50 = vpop.xlane.xlu1 %440  ;;  %v634_v34 = vsel %vm386_vm0, %v613_v25, 0.0 }
 0x32e   : > { %v447_v36 = vmul.f32 0.03125, %v441_v50 }
 0x330   : > { %v453_v51 = vadd.f32 1e-05, %v447_v36  ;;  %v981_v3 = vpop.permute.xlu0 %980 }
 0x331   : > { %v607_v52 = vpop.permute.xlu1 %606  ;;  %v999_v6 = vsel %vm386_vm0, %v981_v3, 0.0 }
 0x332   : > { %1448 = vrsqrt.f32 %v453_v51  ;;  %v625_v55 = vsel %vm386_vm0, %v607_v52, 0.0 }
 0x333   : > { %626 = vadd.xlane.f32.xlu1 %v625_v55 }
 0x334   : > { %v2208_v51 = vpop.permute.xlu0 %664 }
 0x335   : > { %v611_v57 = vpop.permute.xlu1 %610 }
 0x336   : > { %v631_v39 = vsel %vm386_vm0, %v611_v57, 0.0 }
 0x337   : > { %632 = vadd.xlane.f32.xlu1 %v631_v39 }
 0x339   : > { %v794_v58 = vpop.permute.xlu1 %793 }
 0x33a   : > { %v812_v32 = vsel %vm386_vm0, %v794_v58, 0.0 }
 0x33b   : > { %813 = vadd.xlane.f32.xlu1 %v812_v32 }
 0x33c   : > { %v1449_v61 = vpop.eup %1448 }
 0x33d   : > { %v465_v42 = vmul.f32 %v1449_v61, %v2019_v0  ;;  %v798_v63 = vpop.permute.xlu1 %797 }
 0x33e   : > { %v818_v1 = vsel %vm386_vm0, %v798_v63, 0.0 }
 0x33f   : > { %v477_v2 = vmul.f32 %v2077_v46, %v465_v42  ;;  %819 = vadd.xlane.f32.xlu1 %v818_v1 }
 0x341   : > { %v489_v41 = vadd.f32 %v2101_v62, %v477_v2  ;;  %v609_v4 = vpop.permute.xlu1 %608 }
 0x342   : > { %v628_v5 = vsel %vm386_vm0, %v609_v4, 0.0 }
 0x343   : > { %v1217_v16 = vmul.f32 -1.442695, %v489_v41  ;;  %629 = vadd.xlane.f32.xlu0 %v628_v5  ;;  %1000 = vadd.xlane.f32.xlu1 %v999_v6 }
 0x345   : > { %1450 = vpow2.f32 %v1217_v16  ;;  %v792_v8 = vpop.permute.xlu1 %791 }
 0x346   : > { %v809_v0 = vsel %vm386_vm0, %v792_v8, 0.0 }
 0x347   : > { %810 = vadd.xlane.f32.xlu0 %v809_v0 }
 0x349   : > { %v796_v11 = vpop.permute.xlu1 %795 }
 0x34a   : > { %v815_v31 = vsel %vm386_vm0, %v796_v11, 0.0 }
 0x34b   : > { %816 = vadd.xlane.f32.xlu0 %v815_v31 }
 0x34d   : > { %v979_v14 = vpop.permute.xlu1 %978 }
 0x34e   : > { %v996_v15 = vsel %vm386_vm0, %v979_v14, 0.0 }
 0x34f   : > { %v1451_v20 = vpop.eup %1450  ;;  %997 = vadd.xlane.f32.xlu0 %v996_v15 }
 0x350   : > { %v513_v37 = vadd.f32 1.0, %v1451_v20 }
 0x352   : > { %1452 = vrcp.f32 %v513_v37 }
 0x353   : > { %v615_v17 = vpop.permute.xlu1 %614 }
 0x354   : > { %v637_v12 = vsel %vm386_vm0, %v615_v17, 0.0 }
 0x357   : > { %v802_v19 = vpop.permute.xlu1 %801 }
 0x358   : > { %v824_v44 = vsel %vm386_vm0, %v802_v19, 0.0 }
 0x35b   : > { %v983_v21 = vpop.permute.xlu1 %982 }
 0x35c   : > { %v1453_v24 = vpop.eup %1452  ;;  %v1002_v60 = vsel %vm386_vm0, %v983_v21, 0.0 }
 0x35d   : > { %v531_v28 = vmul.f32 %v1453_v24, %v489_v41  ;;  %1003 = vadd.xlane.f32.xlu0 %v1002_v60 }
 0x35f   : > { %537 = vst.msk [vmem:[%s2146_s13 + $0x28] sm:$0xff] %vm386_vm0, %v531_v28  ;;  %v985_v29 = vpop.permute.xlu1 %984 }
 0x360   : > { %v1005_v38 = vsel %vm386_vm0, %v985_v29, 0.0 }
 0x361   : > { %635 = vadd.xlane.f32.xlu0 %v634_v34  ;;  %1006 = vadd.xlane.f32.xlu1 %v1005_v38 }
 0x363   : > { %v989_v40 = vpop.permute.xlu1 %988 }
 0x364   : > { %v1011_v50 = vsel %vm386_vm0, %v989_v40, 0.0 }
 0x365   : > { %638 = vadd.xlane.f32.xlu1 %v637_v12 }
 0x367   : > { %v800_v49 = vpop.permute.xlu1 %799 }
 0x368   : > { %v821_v43 = vsel %vm386_vm0, %v800_v49, 0.0 }
 0x369   : > { %822 = vadd.xlane.f32.xlu0 %v821_v43  ;;  %825 = vadd.xlane.f32.xlu1 %v824_v44 }
 0x36b   : > { %v987_v45 = vpop.permute.xlu1 %986 }
 0x36c   : > { %v1008_v36 = vsel %vm386_vm0, %v987_v45, 0.0 }
 0x36d   : > { %1009 = vadd.xlane.f32.xlu0 %v1008_v36  ;;  %1012 = vadd.xlane.f32.xlu1 %v1011_v50 }
 0x36f   : > { %v2212_v39 = vpop.permute.xlu1 %851 }
 0x373   : > { %v2216_v61 = vpop.permute.xlu1 %673 }
 0x37e   : > { %860 = vrot.lane.b32.xlu1 %v2101_v62, %s1697_s6 }
 0x383   : > { %1038 = vrot.lane.b32.xlu0 %v2077_v46, %s1696_s17 }
 0x387   : > { %1047 = vrot.lane.b32.xlu0 %v2101_v62, %s1696_s17  ;;  %s1624_s17 = sshll.u32 %s1699_s26, 4  ;;  %s1625_s17 = int_to_ptr.vmem [resolvable:$false] %s1624_s17 }
 0x388   : > { %s1626_s6 = scalar_lea.vmem %s1625_s17, 1536  ;;  %p1627_p10 = scmp.lt.s32.totalorder %s2359_s23, %s1625_s17 }
 0x389   : > { %p1628_p11 = scmp.lt.s32.totalorder %s1626_s6, %s1620_s24 }
 0x38b   : > { %p1629_p3 = por %p1628_p11, %p1627_p10 }
 0x38c   : > { %v624_v52 = vpop.xlane.xlu0 %623 }
 0x38d   : > { %v640_v55 = vmul.f32 0.03125, %v624_v52  ;;  %p1630_p7 = pnand %p1629_p3, %p1623_p8 }
 0x38f   : > { %v646_v57 = vadd.f32 1e-05, %v640_v55 }
 0x391   : > { %1454 = vrsqrt.f32 %v646_v57 }
 0x39b   : > { %v1455_v25 = vpop.eup %1454 }
 0x39c   : > { %v658_v58 = vmul.f32 %v1455_v25, %v2011_v54 }
 0x39e   : > { %v667_v32 = vmul.f32 %v2208_v51, %v658_v58 }
 0x3a0   : > { %v676_v46 = vadd.f32 %v2216_v61, %v667_v32 }
 0x3a2   : > { %v1218_v42 = vmul.f32 -1.442695, %v676_v46 }
 0x3a4   : > { %1456 = vpow2.f32 %v1218_v42 }
 0x3ae   : > { %v1457_v63 = vpop.eup %1456 }
 0x3af   : > { %v700_v62 = vadd.f32 1.0, %v1457_v63 }
 0x3b1   : > { %1458 = vrcp.f32 %v700_v62 }
 0x3bb   : > { %v1459_v1 = vpop.eup %1458 }
 0x3bc   : > { %v718_v2 = vmul.f32 %v1459_v1, %v676_v46 }
 0x3be   : > { %725 = vst.msk [vmem:[%s2146_s13] sm:$0xff] %vm724_vm1, %v718_v2 }
 0x3c0   : > { %v627_v3 = vpop.xlane.xlu1 %626 }
 0x3c1   : > { %v641_v41 = vmul.f32 0.03125, %v627_v3 }
 0x3c3   : > { %v647_v4 = vadd.f32 1e-05, %v641_v41 }
 0x3c4   : > { %v633_v54 = vpop.xlane.xlu1 %632 }
 0x3c5   : > { %1460 = vrsqrt.f32 %v647_v4  ;;  %v643_v5 = vmul.f32 0.03125, %v633_v54 }
 0x3c7   : > { %v649_v6 = vadd.f32 1e-05, %v643_v5 }
 0x3c8   : > { %v814_v24 = vpop.xlane.xlu1 %813 }
 0x3c9   : > { %1462 = vrsqrt.f32 %v649_v6  ;;  %v828_v38 = vmul.f32 0.03125, %v814_v24 }
 0x3cb   : > { %v834_v44 = vadd.f32 1e-05, %v828_v38 }
 0x3cc   : > { %v820_v28 = vpop.xlane.xlu1 %819 }
 0x3cf   : > { %v1461_v16 = vpop.eup %1460 }
 0x3d0   : > { %v659_v8 = vmul.f32 %v1461_v16, %v2025_v7  ;;  %v630_v0 = vpop.xlane.xlu0 %629  ;;  %v1001_v45 = vpop.xlane.xlu1 %1000 }
 0x3d1   : > { %v642_v11 = vmul.f32 0.03125, %v630_v0  ;;  %v1015_v32 = vmul.f32 0.03125, %v1001_v45 }
 0x3d2   : > { %v668_v31 = vmul.f32 %v2208_v51, %v659_v8 }
 0x3d3   : > { %v1463_v14 = vpop.eup %1462  ;;  %v648_v15 = vadd.f32 1e-05, %v642_v11  ;;  %v1021_v1 = vadd.f32 1e-05, %v1015_v32 }
 0x3d4   : > { %v677_v20 = vadd.f32 %v2216_v61, %v668_v31  ;;  %v661_v37 = vmul.f32 %v1463_v14, %v2028_v9  ;;  %v811_v60 = vpop.xlane.xlu0 %810  ;;  %v830_v9 = vmul.f32 0.03125, %v820_v28 }
 0x3d5   : > { %1464 = vrsqrt.f32 %v648_v15  ;;  %v827_v50 = vmul.f32 0.03125, %v811_v60 }
 0x3d6   : > { %v1219_v17 = vmul.f32 -1.442695, %v677_v20  ;;  %v670_v19 = vmul.f32 %v2208_v51, %v661_v37  ;;  %v836_v58 = vadd.f32 1e-05, %v830_v9 }
 0x3d7   : > { %v833_v46 = vadd.f32 1e-05, %v827_v50 }
 0x3d8   : > { %1466 = vpow2.f32 %v1219_v17  ;;  %v679_v21 = vadd.f32 %v2216_v61, %v670_v19  ;;  %v817_v29 = vpop.xlane.xlu0 %816 }
 0x3d9   : > { %v829_v52 = vmul.f32 0.03125, %v817_v29 }
 0x3da   : > { %v1221_v7 = vmul.f32 -1.442695, %v679_v21 }
 0x3db   : > { %v835_v63 = vadd.f32 1e-05, %v829_v52 }
 0x3dc   : > { %1468 = vpow2.f32 %v1221_v7  ;;  %v998_v55 = vpop.xlane.xlu0 %997 }
 0x3dd   : > { %v1014_v42 = vmul.f32 0.03125, %v998_v55 }
 0x3df   : > { %v1465_v34 = vpop.eup %1464  ;;  %v1020_v3 = vadd.f32 1e-05, %v1014_v42 }
 0x3e0   : > { %v660_v40 = vmul.f32 %v1465_v34, %v2059_v30 }
 0x3e2   : > { %v1467_v12 = vpop.eup %1466  ;;  %v669_v43 = vmul.f32 %v2208_v51, %v660_v40 }
 0x3e3   : > { %v701_v49 = vadd.f32 1.0, %v1467_v12 }
 0x3e4   : > { %v2230_v36 = vadd.f32 %v2216_v61, %v669_v43 }
 0x3e5   : > { %1470 = vrcp.f32 %v701_v49 }
 0x3e6   : > { %v1469_v57 = vpop.eup %1468  ;;  %v1220_v30 = vmul.f32 -1.442695, %v2230_v36  ;;  %1472 = vrsqrt.f32 %v834_v44 }
 0x3e7   : > { %v703_v25 = vadd.f32 1.0, %v1469_v57 }
 0x3e9   : > { %1474 = vrcp.f32 %v703_v25 }
 0x3ea   : > { %1476 = vpow2.f32 %v1220_v30  ;;  %v1004_v62 = vpop.xlane.xlu0 %1003 }
 0x3eb   : > { %1478 = vrsqrt.f32 %v836_v58  ;;  %v1016_v2 = vmul.f32 0.03125, %v1004_v62 }
 0x3ec   : > { %1480 = vrsqrt.f32 %v833_v46 }
 0x3ed   : > { %1482 = vrsqrt.f32 %v835_v63  ;;  %v1022_v41 = vadd.f32 1e-05, %v1016_v2 }
 0x3ee   : > { %v1007_v4 = vpop.xlane.xlu1 %1006  ;;  %v636_v54 = vpop.xlane.xlu0 %635  ;;  %1484 = vrsqrt.f32 %v1021_v1 }
 0x3ef   : > { %v1471_v5 = vpop.eup %1470  ;;  %v1017_v6 = vmul.f32 0.03125, %v1007_v4  ;;  %v644_v16 = vmul.f32 0.03125, %v636_v54  ;;  %1486 = vrsqrt.f32 %v1020_v3 }
 0x3f0   : > { %v719_v8 = vmul.f32 %v1471_v5, %v677_v20  ;;  %1488 = vrsqrt.f32 %v1022_v41  ;;  %v1473_v31 = vpop.eup %1472 }
 0x3f1   : > { %v1023_v0 = vadd.f32 1e-05, %v1017_v6  ;;  %v650_v11 = vadd.f32 1e-05, %v644_v16  ;;  %v846_v12 = vmul.f32 %v1473_v31, %v2036_v13 }
 0x3f2   : > { %726 = vst.msk [vmem:[%s2146_s13 + $0x8] sm:$0xff] %vm724_vm1, %v719_v8  ;;  %v639_v14 = vpop.xlane.xlu1 %638 }
 0x3f3   : > { %v1475_v15 = vpop.eup %1474  ;;  %1490 = vrsqrt.f32 %v1023_v0  ;;  %v645_v37 = vmul.f32 0.03125, %v639_v14  ;;  %v855_v32 = vmul.f32 %v2212_v39, %v846_v12 }
 0x3f4   : > { %v1477_v17 = vpop.eup %1476  ;;  %v721_v19 = vmul.f32 %v1475_v15, %v679_v21  ;;  %1492 = vrsqrt.f32 %v650_v11 }
 0x3f5   : > { %v1479_v24 = vpop.eup %1478  ;;  %v702_v60 = vadd.f32 1.0, %v1477_v17  ;;  %v651_v7 = vadd.f32 1e-05, %v645_v37 }
 0x3f6   : > { %v1481_v28 = vpop.eup %1480  ;;  %728 = vst.msk [vmem:[%s2146_s13 + $0x18] sm:$0xff] %vm724_vm1, %v721_v19  ;;  %v826_v20 = vpop.xlane.xlu1 %825  ;;  %v848_v49 = vmul.f32 %v1479_v24, %v2045_v23 }
 0x3f7   : > { %v823_v29 = vpop.xlane.xlu0 %822  ;;  %v1483_v34 = vpop.eup %1482  ;;  %1494 = vrcp.f32 %v702_v60  ;;  %v832_v38 = vmul.f32 0.03125, %v826_v20  ;;  %v845_v44 = vmul.f32 %v1481_v28, %v2070_v35 }
 0x3f8   : > { %v831_v40 = vmul.f32 0.03125, %v823_v29  ;;  %1496 = vrsqrt.f32 %v651_v7  ;;  %v1485_v9 = vpop.eup %1484  ;;  %v847_v55 = vmul.f32 %v1483_v34, %v2083_v48  ;;  %v857_v13 = vmul.f32 %v2212_v39, %v848_v49 }
 0x3f9   : > { %v838_v21 = vadd.f32 1e-05, %v832_v38  ;;  %v1487_v45 = vpop.eup %1486  ;;  %v854_v42 = vmul.f32 %v2212_v39, %v845_v44  ;;  %v1033_v35 = vmul.f32 %v1485_v9, %v2052_v27 }
 0x3fa   : > { %v837_v43 = vadd.f32 1e-05, %v831_v40  ;;  %v1013_v50 = vpop.xlane.xlu1 %1012  ;;  %v1489_v57 = vpop.eup %1488  ;;  %v856_v48 = vmul.f32 %v2212_v39, %v847_v55  ;;  %v1032_v2 = vmul.f32 %v1487_v45, %v2089_v56 }
 0x3fb   : > { %v1010_v52 = vpop.xlane.xlu0 %1009  ;;  %1498 = vrsqrt.f32 %v838_v21  ;;  %v1019_v25 = vmul.f32 0.03125, %v1013_v50  ;;  %v1034_v3 = vmul.f32 %v1489_v57, %v2120_v26 }
 0x3fc   : > { %v1018_v58 = vmul.f32 0.03125, %v1010_v52  ;;  %1500 = vrsqrt.f32 %v837_v43 }
 0x3fd   : > { %v1491_v23 = vpop.eup %1490  ;;  %v1025_v30 = vadd.f32 1e-05, %v1019_v25 }
 0x3fe   : > { %v1024_v46 = vadd.f32 1e-05, %v1018_v58  ;;  %v1493_v63 = vpop.eup %1492  ;;  %v861_v62 = vpop.permute.xlu1 %860  ;;  %v1035_v41 = vmul.f32 %v1491_v23, %v2126_v33 }
 0x3ff   : > { %v2246_v1 = vpop.permute.xlu0 %1038  ;;  %v662_v4 = vmul.f32 %v1493_v63, %v2042_v22  ;;  %1502 = vrsqrt.f32 %v1025_v30  ;;  %v2252_v54 = vadd.f32 %v861_v62, %v854_v42  ;;  %v2254_v5 = vadd.f32 %v861_v62, %v855_v32 }
 0x400   : > { %1504 = vrsqrt.f32 %v1024_v46  ;;  %v2256_v27 = vadd.f32 %v861_v62, %v856_v48  ;;  %v2258_v6 = vadd.f32 %v861_v62, %v857_v13  ;;  %v1041_v16 = vmul.f32 %v2246_v1, %v1032_v2 }
 0x401   : > { %v1495_v56 = vpop.eup %1494  ;;  %v671_v26 = vmul.f32 %v2208_v51, %v662_v4  ;;  %v1224_v33 = vmul.f32 -1.442695, %v2252_v54  ;;  %v1225_v22 = vmul.f32 -1.442695, %v2254_v5  ;;  %v1042_v8 = vmul.f32 %v2246_v1, %v1033_v35 }
 0x402   : > { %v1497_v0 = vpop.eup %1496  ;;  %v720_v11 = vmul.f32 %v1495_v56, %v2230_v36  ;;  %v1226_v31 = vmul.f32 -1.442695, %v2256_v27  ;;  %v1227_v14 = vmul.f32 -1.442695, %v2258_v6  ;;  %v1043_v15 = vmul.f32 %v2246_v1, %v1034_v3 }
 0x403   : > { %v1048_v37 = vpop.permute.xlu0 %1047  ;;  %v2270_v17 = vadd.f32 %v2216_v61, %v671_v26  ;;  %v663_v19 = vmul.f32 %v1497_v0, %v2109_v10  ;;  %1506 = vpow2.f32 %v1224_v33  ;;  %v1044_v24 = vmul.f32 %v2246_v1, %v1035_v41 }
 0x404   : > { %727 = vst.msk [vmem:[%s2146_s13 + $0x10] sm:$0xff] %vm724_vm1, %v720_v11  ;;  %1508 = vpow2.f32 %v1225_v22  ;;  %v2276_v60 = vadd.f32 %v1048_v37, %v1041_v16  ;;  %v2278_v36 = vadd.f32 %v1048_v37, %v1042_v8  ;;  %v2280_v7 = vadd.f32 %v1048_v37, %v1043_v15 }
 0x405   : > { %v1499_v28 = vpop.eup %1498  ;;  %v1222_v20 = vmul.f32 -1.442695, %v2270_v17  ;;  %v672_v29 = vmul.f32 %v2208_v51, %v663_v19  ;;  %1510 = vpow2.f32 %v1226_v31  ;;  %v2284_v34 = vadd.f32 %v1048_v37, %v1044_v24 }
 0x406   : > { %v1501_v10 = vpop.eup %1500  ;;  %v850_v38 = vmul.f32 %v1499_v28, %v2115_v18  ;;  %1512 = vpow2.f32 %v1227_v14  ;;  %v1230_v40 = vmul.f32 -1.442695, %v2276_v60  ;;  %v1231_v12 = vmul.f32 -1.442695, %v2278_v36 }
 0x407   : > { %1514 = vpow2.f32 %v1222_v20  ;;  %v2290_v49 = vadd.f32 %v2216_v61, %v672_v29  ;;  %v849_v9 = vmul.f32 %v1501_v10, %v2139_v53  ;;  %v1232_v21 = vmul.f32 -1.442695, %v2280_v7 }
 0x408   : > { %v859_v51 = vmul.f32 %v2212_v39, %v850_v38  ;;  %1516 = vpow2.f32 %v1230_v40  ;;  %v1233_v43 = vmul.f32 -1.442695, %v2284_v34 }
 0x409   : > { %v1503_v44 = vpop.eup %1502  ;;  %v1223_v18 = vmul.f32 -1.442695, %v2290_v49  ;;  %v858_v45 = vmul.f32 %v2212_v39, %v849_v9  ;;  %1518 = vpow2.f32 %v1231_v12 }
 0x40a   : > { %v1505_v50 = vpop.eup %1504  ;;  %v2298_v52 = vadd.f32 %v861_v62, %v859_v51  ;;  %v1037_v61 = vmul.f32 %v1503_v44, %v2133_v47  ;;  %1520 = vpow2.f32 %v1232_v21 }
 0x40b   : > { %1522 = vpow2.f32 %v1223_v18  ;;  %v2301_v53 = vadd.f32 %v861_v62, %v858_v45  ;;  %v1036_v55 = vmul.f32 %v1505_v50, %v2152_v59 }
 0x40c   : > { %v1229_v57 = vmul.f32 -1.442695, %v2298_v52  ;;  %v1046_v25 = vmul.f32 %v2246_v1, %v1037_v61  ;;  %1524 = vpow2.f32 %v1233_v43 }
 0x40d   : > { %v1507_v58 = vpop.eup %1506  ;;  %v1228_v39 = vmul.f32 -1.442695, %v2301_v53  ;;  %v1045_v32 = vmul.f32 %v2246_v1, %v1036_v55 }
 0x40e   : > { %v1509_v13 = vpop.eup %1508  ;;  %1526 = vpow2.f32 %v1229_v57  ;;  %v887_v23 = vadd.f32 1.0, %v1507_v58  ;;  %v2308_v47 = vadd.f32 %v1048_v37, %v1046_v25 }
 0x40f   : > { %v1511_v30 = vpop.eup %1510  ;;  %1528 = vpow2.f32 %v1228_v39  ;;  %v888_v46 = vadd.f32 1.0, %v1509_v13  ;;  %v2310_v42 = vadd.f32 %v1048_v37, %v1045_v32 }
 0x410   : > { %v1513_v59 = vpop.eup %1512  ;;  %v889_v35 = vadd.f32 1.0, %v1511_v30  ;;  %1530 = vrcp.f32 %v887_v23  ;;  %v1235_v3 = vmul.f32 -1.442695, %v2308_v47 }
 0x411   : > { %v1515_v63 = vpop.eup %1514  ;;  %v890_v62 = vadd.f32 1.0, %v1513_v59  ;;  %1532 = vrcp.f32 %v888_v46  ;;  %v1234_v48 = vmul.f32 -1.442695, %v2310_v42 }
 0x412   : > { %v1517_v2 = vpop.eup %1516  ;;  %v704_v1 = vadd.f32 1.0, %v1515_v63  ;;  %1534 = vrcp.f32 %v889_v35 }
 0x413   : > { %v1519_v41 = vpop.eup %1518  ;;  %1536 = vrcp.f32 %v890_v62  ;;  %v1074_v4 = vadd.f32 1.0, %v1517_v2 }
 0x414   : > { %v1521_v16 = vpop.eup %1520  ;;  %1538 = vrcp.f32 %v704_v1  ;;  %v1075_v26 = vadd.f32 1.0, %v1519_v41 }
 0x415   : > { %v1523_v56 = vpop.eup %1522  ;;  %1540 = vpow2.f32 %v1234_v48  ;;  %v1076_v8 = vadd.f32 1.0, %v1521_v16 }
 0x416   : > { %v1525_v33 = vpop.eup %1524  ;;  %v705_v22 = vadd.f32 1.0, %v1523_v56  ;;  %1542 = vpow2.f32 %v1235_v3 }
 0x417   : > { %1544 = vrcp.f32 %v1074_v4  ;;  %v1077_v14 = vadd.f32 1.0, %v1525_v33 }
 0x418   : > { %v1527_v0 = vpop.eup %1526  ;;  %1546 = vrcp.f32 %v705_v22 }
 0x419   : > { %v1529_v11 = vpop.eup %1528  ;;  %v892_v31 = vadd.f32 1.0, %v1527_v0  ;;  %1548 = vrcp.f32 %v1075_v26 }
 0x41a   : > { %v1531_v15 = vpop.eup %1530  ;;  %v891_v37 = vadd.f32 1.0, %v1529_v11  ;;  %1550 = vrcp.f32 %v1076_v8 }
 0x41b   : > { %v1533_v19 = vpop.eup %1532  ;;  %1552 = vrcp.f32 %v892_v31  ;;  %v905_v24 = vmul.f32 %v1531_v15, %v2252_v54 }
 0x41c   : > { %v1535_v28 = vpop.eup %1534  ;;  %1554 = vrcp.f32 %v891_v37  ;;  %v906_v20 = vmul.f32 %v1533_v19, %v2254_v5 }
 0x41d   : > { %v1537_v29 = vpop.eup %1536  ;;  %v907_v10 = vmul.f32 %v1535_v28, %v2256_v27  ;;  %912 = vst.msk [vmem:[%s2146_s13] sm:$0xff] %vm911_vm2, %v905_v24  ;;  %1556 = vrcp.f32 %v1077_v14 }
 0x41e   : > { %v1539_v38 = vpop.eup %1538  ;;  %v908_v40 = vmul.f32 %v1537_v29, %v2258_v6  ;;  %913 = vst.msk [vmem:[%s2146_s13 + $0x8] sm:$0xff] %vm911_vm2, %v906_v20 }
 0x41f   : > { %v1541_v12 = vpop.eup %1540  ;;  %v722_v9 = vmul.f32 %v1539_v38, %v2270_v17  ;;  %914 = vst.msk [vmem:[%s2146_s13 + $0x10] sm:$0xff] %vm911_vm2, %v907_v10 }
 0x420   : > { %v1543_v54 = vpop.eup %1542  ;;  %915 = vst.msk [vmem:[%s2146_s13 + $0x18] sm:$0xff] %vm911_vm2, %v908_v40  ;;  %v1078_v5 = vadd.f32 1.0, %v1541_v12 }
 0x421   : > { %v1545_v27 = vpop.eup %1544  ;;  %729 = vst.msk [vmem:[%s2146_s13 + $0x20] sm:$0xff] %vm724_vm1, %v722_v9  ;;  %v1079_v21 = vadd.f32 1.0, %v1543_v54 }
 0x422   : > { %v1547_v6 = vpop.eup %1546  ;;  %1558 = vrcp.f32 %v1078_v5  ;;  %v1092_v51 = vmul.f32 %v1545_v27, %v2276_v60 }
 0x423   : > { %v1549_v17 = vpop.eup %1548  ;;  %v723_v43 = vmul.f32 %v1547_v6, %v2290_v49  ;;  %1560 = vrcp.f32 %v1079_v21 }
 0x424   : > { %v1551_v44 = vpop.eup %1550  ;;  %v1093_v18 = vmul.f32 %v1549_v17, %v2278_v36  ;;  %1099 = vst.msk [vmem:[%s2146_s13] sm:$0xff] %vm1098_vm3, %v1092_v51 }
 0x425   : > { %v1553_v45 = vpop.eup %1552  ;;  %730 = vst.msk [vmem:[%s2146_s13 + $0x28] sm:$0xff] %vm724_vm1, %v723_v43  ;;  %v1094_v50 = vmul.f32 %v1551_v44, %v2280_v7 }
 0x426   : > { %v1555_v60 = vpop.eup %1554  ;;  %v910_v61 = vmul.f32 %v1553_v45, %v2298_v52  ;;  %1100 = vst.msk [vmem:[%s2146_s13 + $0x8] sm:$0xff] %vm1098_vm3, %v1093_v18 }
 0x427   : > { %v1557_v49 = vpop.eup %1556  ;;  %v909_v55 = vmul.f32 %v1555_v60, %v2301_v53  ;;  %1101 = vst.msk [vmem:[%s2146_s13 + $0x10] sm:$0xff] %vm1098_vm3, %v1094_v50 }
 0x428   : > { %917 = vst.msk [vmem:[%s2146_s13 + $0x28] sm:$0xff] %vm911_vm2, %v910_v61  ;;  %v1095_v36 = vmul.f32 %v1557_v49, %v2284_v34 }
 0x429   : > { %916 = vst.msk [vmem:[%s2146_s13 + $0x20] sm:$0xff] %vm911_vm2, %v909_v55 }
 0x42a   : > { %1102 = vst.msk [vmem:[%s2146_s13 + $0x18] sm:$0xff] %vm1098_vm3, %v1095_v36 }
 0x42c   : > { %v1559_v7 = vpop.eup %1558 }
 0x42d   : > { %v1561_v52 = vpop.eup %1560  ;;  %v1096_v57 = vmul.f32 %v1559_v7, %v2310_v42 }
 0x42e   : > { %v1097_v53 = vmul.f32 %v1561_v52, %v2308_v47 }
 0x42f   : > { %1103 = vst.msk [vmem:[%s2146_s13 + $0x20] sm:$0xff] %vm1098_vm3, %v1096_v57 }
 0x430   : > { %1104 = vst.msk [vmem:[%s2146_s13 + $0x28] sm:$0xff] %vm1098_vm3, %v1097_v53 }
 0x431   : > { %1633 = shalt.err (!%p1630_p7)
}
 0x432   : > { %s1634_s14 = scalar_lea.hbm %s2356_s12, 768  ;;  %s1638_s29 = scalar_lea.hbm %s2412_s5, 1536 }
 0x433   : > { %p1635_p9 = scmp.ne.s32.totalorder %s2356_s12, %s1634_s14  ;;  %p1639_p5 = scmp.lt.u32.totalorder %s2356_s12, %s2412_s5 }
 0x434   : > { %p1640_p13 = scmp.lt.u32.totalorder %s1638_s29, %s1634_s14  ;;  %p1642_p4 = scmp.lt.u32.totalorder %s1634_s14, %s2356_s12 }
 0x435   : > { %p1636_p1 = pnand %p1635_p9, %p1826_p12 }
 0x436   : > { %p1641_p2 = por %p1640_p13, %p1639_p5 }
 0x437   : > { %p1637_p0 = pneg %p1636_p1 }
 0x438   : > { %p1643_p6 = por %p1642_p4, %p1641_p2 }
 0x43a   : > { %p1644_p8 = pnand %p1643_p6, %p1637_p0 }
 0x43c   : > { %1647 = shalt.err (!%p1644_p8)
}
 0x43d   : > { %s1700_s16 = smov 128   ;;  %s1701_s10 = smov 8  }
 0x43e   : > { %1360 = dma.vmem_to_hbm [thread:$0]  (%p1826_p12), %s2359_s23, 768, %s2356_s12, %s1106_s22, %s1700_s16, %s1700_s16, %s1701_s10  }
 0x43f PF: > { %s1134_s28 = sand.u32 1, %s1678_s18   ;;  %p2429_p10 = scmp.ne.s32.totalorder %s2418_s25, 0 }
 0x440   : > { %p2430_p11 = scmp.ge.s32.totalorder %s1690_s21, 2  ;;  %s1135_s24 = scalar_lea.sflag [#allocation4], %s1134_s28 }
 0x442   : > { %p1371_p3 = pnand %p2430_p11, %p2429_p10 }
 0x444   : > { %1673 = dma.done.wait (!%p1371_p3), %s1135_s24, 768  }
 0x445   : > { %1675 = vsyncadd (!%p1371_p3), %s1135_s24, 4294966528  ;;  %p19_p7 = scmp.ge.s32.totalorder %s1788_s30, 4   ;;  %s2431_s18 = smov %s1682_s19 }
 0x446   : > { %s2432_s19 = smov %s1686_s20  ;;  %s2433_s20 = smov %s1822_s8 }
 0x447   : > { %s2434_s21 = smov %s1788_s30  ;;  %21 = sbr.rel (!%p19_p7) target bundleno = 6 (0x6), region = 89 }
 0x44e   :  { %1140 = vsyncpa [#allocation3], 1 }
 0x44f   :  { %1142 = vsyncpa [#allocation3 + $0x1], 1 }
 0x450   :  { %1143 = vsyncpa [#allocation6], 1 }
 0x451   :  { %1144 = vsyncpa [#allocation4], 1 }
 0x452   :  { %1146 = vsyncpa [#allocation4 + $0x1], 1 }

</bundles_post_ra>
